<compile_context>
chip_gen: v7x
topology: tpu7x:2x2x1
jax: 0.10.0
libtpu: 0.0.40
codegen_flags: <defaults>
</compile_context>

<pallas_src>
import jax
import jax.numpy as jnp
from jax.experimental import pallas as pl
from jax.experimental.pallas import tpu as pltpu


# ----------------------------------------------------------------------------
# Fused kernel: one (TQ, S) attention row tile per grid step.
# Grid = (B, S // TQ): batch outer ("parallel"), row tile inner ("arbitrary").
# ----------------------------------------------------------------------------
def _fused_attn_kernel(x_ref, xw_ref, wq_ref, bq_ref, wkb_ref, bkt_ref,
                       o_ref, w_scr, brow_scr):
    # ---- Per-batch preamble (first row tile of each batch only) ------------
    @pl.when(pl.program_id(1) == 0)
    def _():
        # kr == (x @ wk^T + bk).reshape(Kd, 256) (row-major reinterpretation),
        # produced directly lane-dense by ONE MXU matmul against the
        # block-diagonal K weight: no in-kernel relayout, no narrow stores.
        kr = jnp.dot(xw_ref[...], wkb_ref[...],
                     preferred_element_type=jnp.float32) + bkt_ref[...]   # (Kd, S)
        # Reassociated Q path (scale already folded into wq/bq on the host):
        #   att = x @ (scale*wq^T @ kr) + (scale*bq) @ kr
        w_scr[...] = jnp.dot(wq_ref[...], kr,
                             preferred_element_type=jnp.float32)          # (D, S)
        brow_scr[...] = jnp.dot(bq_ref[...], kr,
                                preferred_element_type=jnp.float32)       # (1, S)

    # ---- Per row tile: attention matmul + row softmax ----------------------
    att = jnp.dot(x_ref[...], w_scr[...],
                  preferred_element_type=jnp.float32) + brow_scr[...]     # (TQ, S)

    m = jnp.max(att, axis=-1, keepdims=True)
    e = jnp.exp(att - m)
    denom = jnp.sum(e, axis=-1, keepdims=True)
    # EUP approximate reciprocal + one Newton-Raphson step (~1e-7 rel err),
    # then a broadcast multiply instead of a (TQ, S) divide.
    inv = pl.reciprocal(denom, approx=True)
    inv = inv * (2.0 - denom * inv)
    o_ref[...] = (e * inv).astype(o_ref.dtype)                            # lane-dense


# ----------------------------------------------------------------------------
# One-time ("module init") parameter preprocessing — hoisted out of the
# per-forward hot path.
# ----------------------------------------------------------------------------
def prepare_self_attention(wq, bq, wk, bk, seq_len=256):
    """wq: (Qd, D), bq: (Qd,), wk: (Kd, D), bk: (Kd,)  (nn.Linear layout)."""
    Qd, D = wq.shape
    Kd = wk.shape[0]
    assert Qd == Kd, "einsum 'bij,bjk->bik' requires qDimension == kDimension"
    assert seq_len % Kd == 0, "block-diagonal K projection needs kDim | 256"
    R = seq_len // Kd

    scale = 1.0 / (float(D) ** 0.5)              # divide by input.shape[2]**0.5
    wq_s_t = (wq.T * scale).astype(jnp.float32)                  # (D, Qd)
    bq_s = (bq * scale).reshape(1, Qd).astype(jnp.float32)       # (1, Qd)

    # Block-diagonal copy of wk^T: x_wide @ wk_blk yields k already in the
    # reshaped (Kd, 256) layout straight off the MXU.  Mostly zeros, but it
    # is a constant built once here and DMA'd once per call.
    wk_blk = jnp.kron(jnp.eye(R, dtype=jnp.float32),
                      wk.T.astype(jnp.float32))                  # (R*D, 256)
    bk_tile = jnp.tile(bk.astype(jnp.float32), R).reshape(1, seq_len)  # (1, 256)
    return wq_s_t, bq_s, wk_blk, bk_tile


# ----------------------------------------------------------------------------
# Forward wrapper
# ----------------------------------------------------------------------------
@jax.jit
def self_attention(x, params):
    """x: (B, 256, D) float32; params from prepare_self_attention()."""
    wq_s_t, bq_s, wk_blk, bk_tile = params
    B, S, D = x.shape
    Qd = wq_s_t.shape[1]
    Kd = Qd
    assert S == 256, "reference module hard-codes reshape(..., kDim, 256)"
    assert S % Kd == 0
    R = S // Kd
    assert wk_blk.shape == (R * D, S)

    TQ = 128 if S % 128 == 0 else S              # query-row tile (2 tiles/batch)

    # Free row-major reinterpretation (no data movement):
    #   x_wide[b, c, r*D:(r+1)*D] = x[b, c*R + r, :]
    x_wide = x.reshape(B, Kd, R * D)

    return pl.pallas_call(
        _fused_attn_kernel,
        out_shape=jax.ShapeDtypeStruct((B, S, S), jnp.float32),
        grid=(B, S // TQ),
        in_specs=[
            pl.BlockSpec((None, TQ, D), lambda b, j: (b, j, 0)),       # x row tile
            pl.BlockSpec((None, Kd, R * D), lambda b, j: (b, 0, 0)),   # x_wide (per batch)
            pl.BlockSpec((D, Qd), lambda b, j: (0, 0)),                # scale*wq^T (resident)
            pl.BlockSpec((1, Qd), lambda b, j: (0, 0)),                # scale*bq   (resident)
            pl.BlockSpec((R * D, S), lambda b, j: (0, 0)),             # block-diag wk^T (resident)
            pl.BlockSpec((1, S), lambda b, j: (0, 0)),                 # tiled bk   (resident)
        ],
        out_specs=pl.BlockSpec((None, TQ, S), lambda b, j: (b, j, 0)),  # lane-dense (256)
        scratch_shapes=[
            pltpu.VMEM((D, S), jnp.float32),    # W     = scale*wq^T @ kr
            pltpu.VMEM((1, S), jnp.float32),    # b_row = scale*bq   @ kr
        ],
        compiler_params=pltpu.CompilerParams(
            dimension_semantics=("parallel", "arbitrary")),
    )(x, x_wide, wq_s_t, bq_s, wk_blk, bk_tile)


# ----------------------------------------------------------------------------
# Pure-JAX reference (float32 mirror of the PyTorch forward) for verification.
# ----------------------------------------------------------------------------
def _reference(x, wq, bq, wk, bk):
    B, S, D = x.shape
    Kd = wk.shape[0]
    q = x @ wq.T + bq
    k = x @ wk.T + bk
    att = jnp.einsum("bij,bjk->bik", q, k.reshape(B, Kd, 256))
    att = att / (D ** 0.5)
    return jax.nn.softmax(att, axis=2)


if __name__ == "__main__":
    B = 2
    S = 256           # forced by the hard-coded reshape(..., kDim, 256)
    D = 32            # inputDimension
    Qd = Kd = 16      # qDimension == kDimension (required by the einsum)

    key = jax.random.PRNGKey(0)
    kx, kwq, kbq, kwk, kbk = jax.random.split(key, 5)

    x = jax.random.normal(kx, (B, S, D), dtype=jnp.float32)

    # Deterministic nn.Linear-style init: U(-1/sqrt(in), 1/sqrt(in)).
    bound = 1.0 / (D ** 0.5)
    wq = jax.random.uniform(kwq, (Qd, D), jnp.float32, -bound, bound)
    bq = jax.random.uniform(kbq, (Qd,), jnp.float32, -bound, bound)
    wk = jax.random.uniform(kwk, (Kd, D), jnp.float32, -bound, bound)
    bk = jax.random.uniform(kbk, (Kd,), jnp.float32, -bound, bound)

    # One-time constant prep (scale folding + block-diagonal K weight).
    params = prepare_self_attention(wq, bq, wk, bk, seq_len=S)

    out = self_attention(x, params)
    out = jax.block_until_ready(out)

    ref = _reference(x, wq, bq, wk, bk)
    assert out.shape == (B, S, S)
    assert jnp.allclose(out, ref, atol=1e-5, rtol=1e-5), "mismatch vs reference"

    print("KERNEL_OK")
</pallas_src>

<mosaic_0001>
module attributes {stable_mosaic.version = 11 : i64} {
  func.func @_fused_attn_kernel(%arg0: i32, %arg1: i32, %arg2: memref<1x128x32xf32, #tpu.memory_space<vmem>>, %arg3: memref<1x16x512xf32, #tpu.memory_space<vmem>>, %arg4: memref<32x16xf32, #tpu.memory_space<vmem>>, %arg5: memref<1x16xf32, #tpu.memory_space<vmem>>, %arg6: memref<512x256xf32, #tpu.memory_space<vmem>>, %arg7: memref<1x256xf32, #tpu.memory_space<vmem>>, %arg8: memref<1x128x256xf32, #tpu.memory_space<vmem>>, %arg9: memref<32x256xf32, #tpu.memory_space<vmem>>, %arg10: memref<1x256xf32, #tpu.memory_space<vmem>>) attributes {dimension_semantics = [#tpu.dimension_semantics<parallel>, #tpu.dimension_semantics<arbitrary>], iteration_bounds = array<i64: 2, 2>, scalar_prefetch = 0 : i64, scratch_operands = 2 : i64, tpu.core_type = #tpu.core_type<tc>, window_params = [{transform_indices = @transform_0, window_bounds = array<i64: 1, 128, 32>}, {transform_indices = @transform_1, window_bounds = array<i64: 1, 16, 512>}, {pipeline_mode = #tpu.pipeline_mode<synchronous>, transform_indices = @transform_2, window_bounds = array<i64: 32, 16>}, {pipeline_mode = #tpu.pipeline_mode<synchronous>, transform_indices = @transform_3, window_bounds = array<i64: 1, 16>}, {pipeline_mode = #tpu.pipeline_mode<synchronous>, transform_indices = @transform_4, window_bounds = array<i64: 512, 256>}, {pipeline_mode = #tpu.pipeline_mode<synchronous>, transform_indices = @transform_5, window_bounds = array<i64: 1, 256>}, {transform_indices = @transform_6, window_bounds = array<i64: 1, 128, 256>}]} {
    %c0_i32 = arith.constant 0 : i32
    %0 = arith.cmpi eq, %arg1, %c0_i32 : i32
    %1 = arith.extui %0 : i1 to i32
    %c0_i32_0 = arith.constant 0 : i32
    %2 = arith.cmpi ne, %1, %c0_i32_0 : i32
    scf.if %2 {
      %c0_13 = arith.constant 0 : index
      %c0_14 = arith.constant 0 : index
      %c0_15 = arith.constant 0 : index
      %27 = vector.load %arg3[%c0_13, %c0_14, %c0_15] : memref<1x16x512xf32, #tpu.memory_space<vmem>>, vector<1x16x512xf32>
      %28 = vector.shape_cast %27 : vector<1x16x512xf32> to vector<16x512xf32>
      %c0_16 = arith.constant 0 : index
      %c0_17 = arith.constant 0 : index
      %29 = vector.load %arg6[%c0_16, %c0_17] : memref<512x256xf32, #tpu.memory_space<vmem>>, vector<512x256xf32>
      %cst_18 = arith.constant dense<0.000000e+00> : vector<16x256xf32>
      %30 = tpu.matmul %28, %29, %cst_18 {dimension_numbers = #tpu.dot_dimension_numbers<[1], [0], [0], [1], [0, 0, 1, 1], [], []>} : vector<16x512xf32>, vector<512x256xf32>, vector<16x256xf32> -> vector<16x256xf32>
      %c0_19 = arith.constant 0 : index
      %c0_20 = arith.constant 0 : index
      %31 = vector.load %arg7[%c0_19, %c0_20] : memref<1x256xf32, #tpu.memory_space<vmem>>, vector<1x256xf32>
      %32 = vector.broadcast %31 : vector<1x256xf32> to vector<16x256xf32>
      %33 = arith.addf %30, %32 : vector<16x256xf32>
      %c0_21 = arith.constant 0 : index
      %c0_22 = arith.constant 0 : index
      %34 = vector.load %arg4[%c0_21, %c0_22] : memref<32x16xf32, #tpu.memory_space<vmem>>, vector<32x16xf32>
      %cst_23 = arith.constant dense<0.000000e+00> : vector<32x256xf32>
      %35 = tpu.matmul %34, %33, %cst_23 {dimension_numbers = #tpu.dot_dimension_numbers<[1], [0], [0], [1], [0, 0, 1, 1], [], []>} : vector<32x16xf32>, vector<16x256xf32>, vector<32x256xf32> -> vector<32x256xf32>
      %c0_24 = arith.constant 0 : index
      %c0_25 = arith.constant 0 : index
      %36 = vector.load %arg9[%c0_24, %c0_25] : memref<32x256xf32, #tpu.memory_space<vmem>>, vector<32x256xf32>
      tpu.vector_store %arg9[%c0_24, %c0_25], %35 {strides = array<i32>} : memref<32x256xf32, #tpu.memory_space<vmem>>, vector<32x256xf32>,
      %c0_26 = arith.constant 0 : index
      %c0_27 = arith.constant 0 : index
      %37 = vector.load %arg5[%c0_26, %c0_27] : memref<1x16xf32, #tpu.memory_space<vmem>>, vector<1x16xf32>
      %cst_28 = arith.constant dense<0.000000e+00> : vector<1x256xf32>
      %38 = tpu.matmul %37, %33, %cst_28 {dimension_numbers = #tpu.dot_dimension_numbers<[1], [0], [0], [1], [0, 0, 1, 1], [], []>} : vector<1x16xf32>, vector<16x256xf32>, vector<1x256xf32> -> vector<1x256xf32>
      %c0_29 = arith.constant 0 : index
      %c0_30 = arith.constant 0 : index
      %39 = vector.load %arg10[%c0_29, %c0_30] : memref<1x256xf32, #tpu.memory_space<vmem>>, vector<1x256xf32>
      tpu.vector_store %arg10[%c0_29, %c0_30], %38 {strides = array<i32>} : memref<1x256xf32, #tpu.memory_space<vmem>>, vector<1x256xf32>,
    } else {
    }
    %c0 = arith.constant 0 : index
    %c0_1 = arith.constant 0 : index
    %c0_2 = arith.constant 0 : index
    %3 = vector.load %arg2[%c0, %c0_1, %c0_2] : memref<1x128x32xf32, #tpu.memory_space<vmem>>, vector<1x128x32xf32>
    %4 = vector.shape_cast %3 : vector<1x128x32xf32> to vector<128x32xf32>
    %c0_3 = arith.constant 0 : index
    %c0_4 = arith.constant 0 : index
    %5 = vector.load %arg9[%c0_3, %c0_4] : memref<32x256xf32, #tpu.memory_space<vmem>>, vector<32x256xf32>
    %cst = arith.constant dense<0.000000e+00> : vector<128x256xf32>
    %6 = tpu.matmul %4, %5, %cst {dimension_numbers = #tpu.dot_dimension_numbers<[1], [0], [0], [1], [0, 0, 1, 1], [], []>} : vector<128x32xf32>, vector<32x256xf32>, vector<128x256xf32> -> vector<128x256xf32>
    %c0_5 = arith.constant 0 : index
    %c0_6 = arith.constant 0 : index
    %7 = vector.load %arg10[%c0_5, %c0_6] : memref<1x256xf32, #tpu.memory_space<vmem>>, vector<1x256xf32>
    %8 = vector.broadcast %7 : vector<1x256xf32> to vector<128x256xf32>
    %9 = arith.addf %6, %8 : vector<128x256xf32>
    %cst_7 = arith.constant dense<0xFF800000> : vector<128xf32>
    %10 = vector.multi_reduction <maximumf>, %9, %cst_7 [1] : vector<128x256xf32> to vector<128xf32>
    %11 = vector.shape_cast %10 : vector<128xf32> to vector<128x1xf32>
    %12 = vector.broadcast %11 : vector<128x1xf32> to vector<128x256xf32>
    %13 = arith.subf %9, %12 : vector<128x256xf32>
    %14 = math.exp %13 : vector<128x256xf32>
    %cst_8 = arith.constant dense<0.000000e+00> : vector<128xf32>
    %15 = vector.multi_reduction <add>, %14, %cst_8 [1] : vector<128x256xf32> to vector<128xf32>
    %16 = vector.shape_cast %15 : vector<128xf32> to vector<128x1xf32>
    %17 = tpu.reciprocal %16 {approx = true} : vector<128x1xf32> -> vector<128x1xf32>
    %18 = arith.mulf %16, %17 : vector<128x1xf32>
    %cst_9 = arith.constant 2.000000e+00 : f32
    %19 = vector.broadcast %cst_9 : f32 to vector<128x1xf32>
    %20 = arith.subf %19, %18 : vector<128x1xf32>
    %21 = arith.mulf %17, %20 : vector<128x1xf32>
    %22 = vector.broadcast %21 : vector<128x1xf32> to vector<128x256xf32>
    %23 = arith.mulf %14, %22 : vector<128x256xf32>
    %c0_10 = arith.constant 0 : index
    %c0_11 = arith.constant 0 : index
    %c0_12 = arith.constant 0 : index
    %24 = vector.load %arg8[%c0_10, %c0_11, %c0_12] : memref<1x128x256xf32, #tpu.memory_space<vmem>>, vector<1x128x256xf32>
    %25 = vector.shape_cast %24 : vector<1x128x256xf32> to vector<128x256xf32>
    %26 = vector.shape_cast %23 : vector<128x256xf32> to vector<1x128x256xf32>
    tpu.vector_store %arg8[%c0_10, %c0_11, %c0_12], %26 {strides = array<i32>} : memref<1x128x256xf32, #tpu.memory_space<vmem>>, vector<1x128x256xf32>,
    return
  }
  func.func @transform_0(%arg0: i32, %arg1: i32) -> (i32, i32, i32) {
    %c0_i32 = arith.constant 0 : i32
    %c0_i32_0 = arith.constant 0 : i32
    return %arg0, %arg1, %c0_i32 : i32, i32, i32
  }
  func.func @transform_1(%arg0: i32, %arg1: i32) -> (i32, i32, i32) {
    %c0_i32 = arith.constant 0 : i32
    %c0_i32_0 = arith.constant 0 : i32
    %c0_i32_1 = arith.constant 0 : i32
    return %arg0, %c0_i32, %c0_i32_0 : i32, i32, i32
  }
  func.func @transform_2(%arg0: i32, %arg1: i32) -> (i32, i32) {
    %c0_i32 = arith.constant 0 : i32
    %c0_i32_0 = arith.constant 0 : i32
    %c0_i32_1 = arith.constant 0 : i32
    return %c0_i32, %c0_i32_0 : i32, i32
  }
  func.func @transform_3(%arg0: i32, %arg1: i32) -> (i32, i32) {
    %c0_i32 = arith.constant 0 : i32
    %c0_i32_0 = arith.constant 0 : i32
    %c0_i32_1 = arith.constant 0 : i32
    return %c0_i32, %c0_i32_0 : i32, i32
  }
  func.func @transform_4(%arg0: i32, %arg1: i32) -> (i32, i32) {
    %c0_i32 = arith.constant 0 : i32
    %c0_i32_0 = arith.constant 0 : i32
    %c0_i32_1 = arith.constant 0 : i32
    return %c0_i32, %c0_i32_0 : i32, i32
  }
  func.func @transform_5(%arg0: i32, %arg1: i32) -> (i32, i32) {
    %c0_i32 = arith.constant 0 : i32
    %c0_i32_0 = arith.constant 0 : i32
    %c0_i32_1 = arith.constant 0 : i32
    return %c0_i32, %c0_i32_0 : i32, i32
  }
  func.func @transform_6(%arg0: i32, %arg1: i32) -> (i32, i32, i32) {
    %c0_i32 = arith.constant 0 : i32
    %c0_i32_0 = arith.constant 0 : i32
    return %arg0, %arg1, %c0_i32 : i32, i32, i32
  }
}

</mosaic_0001>

<bundles_post_ra>
// kernel: self_attention.1
= control target key start
LH: loop header
LB: loop body
LE: loop exit
PB: predicated region body
PF: predicated region fallthrough
CT: control target
= control target key end

     0   :  { %11 = vsyncpa [#allocation5], 0  ;;  %s2927_s0 = inlined_call_operand.vmem [shape: f32[2,256,32], index: 0, kind: input, shape index: {}]   ;;  %s2928_s1 = inlined_call_operand.vmem [shape: f32[2,16,512], index: 1, kind: input, shape index: {}]   ;;  %s2929_s2 = inlined_call_operand.vmem [shape: f32[32,16], index: 2, kind: input, shape index: {}]   ;;  %s2930_s3 = inlined_call_operand.vmem [shape: f32[1,16], index: 3, kind: input, shape index: {}]   ;;  %s2931_s4 = inlined_call_operand.vmem [shape: f32[512,256], index: 4, kind: input, shape index: {}]   ;;  %s2932_s5 = inlined_call_operand.vmem [shape: f32[1,256], index: 5, kind: input, shape index: {}]   ;;  %s2933_s6 = inlined_call_operand.hbm [shape: f32[2,256,256], index: 6, kind: output, shape index: {}]  }
   0x1   :  { %13 = vsyncpa [#allocation5 + $0x1], 0  ;;  %s2005_s21 = smov 0   ;;  %s2007_s22 = smov 0  }
   0x2   :  { %s2009_s23 = smov 0   ;;  %s2011_s24 = smov 0  }
   0x3   :  { %s2013_s25 = smov 0   ;;  %s2015_s26 = smov 0  }
   0x4   :  { %s2017_s27 = smov 0   ;;  %s2019_s28 = smov 0  }
   0x5 LB: > { %2939 = sst [smem:[#allocation7_spill]] %s1954_s26  ;;  %s1496_s29 = sadd.s32 4294967295, %s1962_s28   ;;  %s1962_s28 = sphi %s2019_s28, %s19_s28   ;;  %s1958_s27 = sphi %s2017_s27, %s2951_s27   ;;  %s1954_s26 = sphi %s2015_s26, %s2950_s26   ;;  %s1950_s25 = sphi %s2013_s25, %s2949_s25   ;;  %s1946_s24 = sphi %s2011_s24, %s2948_s24   ;;  %s1942_s23 = sphi %s2009_s23, %s2954_s23   ;;  %s1938_s22 = sphi %s2007_s22, %s2953_s22   ;;  %s1934_s21 = sphi %s2005_s21, %s2952_s21  }
   0x6   : > { %2940 = sst [smem:[#allocation8_spill]] %s1958_s27  ;;  %s1497_s30 = sadd.s32 4294967294, %s1962_s28  }
   0x7   : > { %s28_s7 = sadd.s32 1, %s1954_s26  ;;  %s31_s8 = sadd.s32 1, %s1958_s27 }
   0x8   : > { %p29_p0 = scmp.ge.s32.totalorder %s28_s7, 2  ;;  %p188_p1 = scmp.ne.s32.totalorder %s1942_s23, %s1938_s22 }
   0x9   : > { %p189_p2 = scmp.eq.s32.totalorder %s1496_s29, 3  ;;  %p194_p5 = scmp.ne.s32.totalorder %s1938_s22, %s1934_s21 }
   0xa   : > { %s2956_s7 = smov (%p29_p0, %s28_s7), 0  ;;  %s2958_s8 = smov (!%p29_p0, %s31_s8), %s1958_s27 }
   0xb   : > { %2941 = sst [smem:[#allocation9_spill]] %s2956_s7  ;;  %s174_s9 = ssub.s32 %s1954_s26, %s2956_s7 }
   0xc   : > { %p2056_p3 = por %p189_p2, %p188_p1  ;;  %p33_p4 = scmp.ge.s32.totalorder %s2958_s8, 2 }
   0xd   : > { %p195_p6 = scmp.eq.s32.totalorder %s1497_s30, 3  ;;  %p1500_p7 = scmp.ge.s32.totalorder %s1962_s28, 1 }
   0xe   : > { %s2960_s8 = smov (%p33_p4, %s2958_s8), 0  ;;  %p246_p9 = scmp.lt.s32.totalorder %s1962_s28, 5 }
   0xf   : > { %2943 = sst [smem:[#allocation10_spill]] %s2960_s8  ;;  %p2065_p8 = por %p195_p6, %p194_p5 }
  0x10   : > { %s173_s12 = ssub.s32 %s1958_s27, %s2960_s8  ;;  %s178_s13 = sadd.s32 1, %s1942_s23 }
  0x11   : > { %s175_s14 = sor.u32 %s174_s9, %s173_s12  ;;  %p247_p10 = pnand %p1500_p7, %p246_p9 }
  0x12   : > { %p176_p11 = scmp.eq.s32.totalorder %s175_s14, 0  ;;  %s2938_s16 = sand.u32 (!%p247_p10), 1, %s1938_s22  }
  0x13   : > { %250 = sbr.rel (%p247_p10) target bundleno = 1148 (0x47c), region = 44  ;;  %s1502_s17 = sshll.u32 (!%p247_p10), %s1946_s24, 4 }
  0x14   : > { %s2074_s15 = scalar_select %p176_p11, %s1942_s23, %s178_s13  }
  0x15   : > { %s1501_s18 = sshll.u32 (!%p247_p10), %s2938_s16, 8  ;;  %p286_p12 = scmp.lt.s32.totalorder (!%p247_p10), %s1950_s25, 1 }
  0x16   : > { %2945 = sst [smem:[#allocation11_spill]] %s2074_s15  ;;  %p288_p13 = scmp.lt.s32.totalorder (!%p247_p10), %s1502_s17, 31 }
  0x17   : > { %s2092_s26 = scalar_lea.vmem (!%p247_p10), [#allocation4], %s1501_s18  ;;  %p1507_p0 = scmp.ne.s32.totalorder (!%p247_p10), %s1946_s24, 0 }
  0x1a   : > { %s287_s19 = scalar_select %p286_p12, %s1950_s25, 1 }
  0x1b   : > { %s2962_s17 = smov (!%p288_p13, %s1502_s17), 31  ;;  %304 = sbr.rel (%p1507_p0) target bundleno = 546 (0x222), region = 48 }
  0x1c   : > { %s1503_s20 = sshll.u32 %s287_s19, 5  ;;  %s1536_s29 = sshll.u32 %s287_s19, 6  ;;  %v314_v0 = vld [vmem:[%s2931_s4 + $0x8] sm:$0xff] (!%p1507_p0)  ;;  %v316_v1 = vld [vmem:[%s2931_s4 + $0x18] sm:$0xff] (!%p1507_p0)  ;;  %v313_v2 = vld [vmem:[%s2931_s4] sm:$0xff] (!%p1507_p0)  ;;  %vm611_vm0 = vcmask (!%p1507_p0), 130048  }
  0x1d   : > { %s291_s30 = sadd.s32 %s1503_s20, %s2962_s17  ;;  %s2085_s13 = scalar_lea.vmem %s2928_s1, %s1536_s29  ;;  %v1538_v3 = vpack.c.bf16 (!%p1507_p0), %v316_v1, %v314_v0  ;;  %v315_v4 = vld [vmem:[%s2931_s4 + $0x10] sm:$0xff] (!%p1507_p0)  ;;  %v378_v5 = vld [vmem:[%s2931_s4 + $0x208] sm:$0xff] (!%p1507_p0)  ;;  %v380_v6 = vld [vmem:[%s2931_s4 + $0x218] sm:$0xff] (!%p1507_p0) }
  0x1e   : > { %s1504_s14 = sshll.u32 %s291_s30, 3  ;;  %v1540_v7 = vpack.c.bf16 (!%p1507_p0), %v315_v4, %v313_v2  ;;  %v1602_v8 = vpack.c.bf16 (!%p1507_p0), %v380_v6, %v378_v5  ;;  %v377_v9 = vld [vmem:[%s2931_s4 + $0x200] sm:$0xff] (!%p1507_p0)  ;;  %v379_v10 = vld [vmem:[%s2931_s4 + $0x210] sm:$0xff] (!%p1507_p0)  ;;  %v318_v11 = vld [vmem:[%s2931_s4 + $0x28] sm:$0xff] (!%p1507_p0) }
  0x1f   : > { %s2090_s27 = scalar_lea.vmem %s2927_s0, %s1504_s14  ;;  %1539 = vmatprep.subr.bf16.mxu1 (!%p1507_p0), %v1538_v3  ;;  %v1604_v12 = vpack.c.bf16 (!%p1507_p0), %v379_v10, %v377_v9  ;;  %v320_v13 = vld [vmem:[%s2931_s4 + $0x38] sm:$0xff] (!%p1507_p0)  ;;  %v317_v14 = vld [vmem:[%s2931_s4 + $0x20] sm:$0xff] (!%p1507_p0)  ;;  %v319_v15 = vld [vmem:[%s2931_s4 + $0x30] sm:$0xff] (!%p1507_p0) }
  0x20   : > { %1541 = vmatpush1.bf16.msra.mxu1 (!%p1507_p0), %v1540_v7  ;;  %1603 = vmatprep.subr.bf16.mxu0 (!%p1507_p0), %v1602_v8  ;;  %v1542_v16 = vpack.c.bf16 (!%p1507_p0), %v320_v13, %v318_v11  ;;  %v1544_v17 = vpack.c.bf16 (!%p1507_p0), %v319_v15, %v317_v14  ;;  %v382_v18 = vld [vmem:[%s2931_s4 + $0x228] sm:$0xff] (!%p1507_p0)  ;;  %v384_v19 = vld [vmem:[%s2931_s4 + $0x238] sm:$0xff] (!%p1507_p0)  ;;  %v381_v20 = vld [vmem:[%s2931_s4 + $0x220] sm:$0xff] (!%p1507_p0) }
  0x21   : > { %1605 = vmatpush1.bf16.msra.mxu0 (!%p1507_p0), %v1604_v12  ;;  %v1606_v21 = vpack.c.bf16 (!%p1507_p0), %v384_v19, %v382_v18  ;;  %v383_v22 = vld [vmem:[%s2931_s4 + $0x230] sm:$0xff] (!%p1507_p0)  ;;  %v322_v23 = vld [vmem:[%s2931_s4 + $0x48] sm:$0xff] (!%p1507_p0)  ;;  %v324_v24 = vld [vmem:[%s2931_s4 + $0x58] sm:$0xff] (!%p1507_p0) }
  0x22   : > { %1543 = vmatprep.subr.bf16.mxu1 %v1542_v16  ;;  %v1608_v25 = vpack.c.bf16 %v383_v22, %v381_v20  ;;  %v1546_v26 = vpack.c.bf16 %v324_v24, %v322_v23  ;;  %v321_v27 = vld [vmem:[%s2931_s4 + $0x40] sm:$0xff]  ;;  %v323_v28 = vld [vmem:[%s2931_s4 + $0x50] sm:$0xff]  ;;  %v386_v29 = vld [vmem:[%s2931_s4 + $0x248] sm:$0xff] }
  0x23   : > { %1607 = vmatprep.subr.bf16.mxu0 %v1606_v21  ;;  %v388_v30 = vld [vmem:[%s2931_s4 + $0x258] sm:$0xff]  ;;  %v385_v31 = vld [vmem:[%s2931_s4 + $0x240] sm:$0xff]  ;;  %v387_v32 = vld [vmem:[%s2931_s4 + $0x250] sm:$0xff]  ;;  %v1548_v33 = vpack.c.bf16 %v323_v28, %v321_v27 }
  0x24   : > { %1545 = vmatpush1.bf16.msra.mxu1 %v1544_v17  ;;  %v1610_v34 = vpack.c.bf16 %v388_v30, %v386_v29  ;;  %v326_v35 = vld [vmem:[%s2931_s4 + $0x68] sm:$0xff]  ;;  %v328_v36 = vld [vmem:[%s2931_s4 + $0x78] sm:$0xff]  ;;  %v325_v37 = vld [vmem:[%s2931_s4 + $0x60] sm:$0xff]  ;;  %v1612_v38 = vpack.c.bf16 %v387_v32, %v385_v31 }
  0x25   : > { %1609 = vmatpush1.bf16.msra.mxu0 %v1608_v25  ;;  %1547 = vmatprep.subr.bf16.mxu1 %v1546_v26  ;;  %v1550_v39 = vpack.c.bf16 %v328_v36, %v326_v35  ;;  %v327_v40 = vld [vmem:[%s2931_s4 + $0x70] sm:$0xff]  ;;  %v390_v41 = vld [vmem:[%s2931_s4 + $0x268] sm:$0xff]  ;;  %v392_v42 = vld [vmem:[%s2931_s4 + $0x278] sm:$0xff] }
  0x26   : > { %1611 = vmatprep.subr.bf16.mxu0 %v1610_v34  ;;  %v1614_v43 = vpack.c.bf16 %v392_v42, %v390_v41  ;;  %v389_v44 = vld [vmem:[%s2931_s4 + $0x260] sm:$0xff]  ;;  %v391_v45 = vld [vmem:[%s2931_s4 + $0x270] sm:$0xff]  ;;  %v330_v46 = vld [vmem:[%s2931_s4 + $0x88] sm:$0xff]  ;;  %v1552_v48 = vpack.c.bf16 %v327_v40, %v325_v37 }
  0x27   : > { %v332_v47 = vld [vmem:[%s2931_s4 + $0x98] sm:$0xff]  ;;  %v394_v49 = vld [vmem:[%s2931_s4 + $0x288] sm:$0xff]  ;;  %v1616_v51 = vpack.c.bf16 %v391_v45, %v389_v44  ;;  %v329_v53 = vld [vmem:[%s2931_s4 + $0x80] sm:$0xff] }
  0x28   : > { %1549 = vmatpush1.bf16.msra.mxu1 %v1548_v33  ;;  %v396_v50 = vld [vmem:[%s2931_s4 + $0x298] sm:$0xff]  ;;  %v1554_v52 = vpack.c.bf16 %v332_v47, %v330_v46  ;;  %v331_v54 = vld [vmem:[%s2931_s4 + $0x90] sm:$0xff]  ;;  %v393_v55 = vld [vmem:[%s2931_s4 + $0x280] sm:$0xff] }
  0x29   : > { %1613 = vmatpush1.bf16.msra.mxu0 %v1612_v38  ;;  %1551 = vmatprep.subr.bf16.mxu1 %v1550_v39  ;;  %v1618_v56 = vpack.c.bf16 %v396_v50, %v394_v49  ;;  %v395_v57 = vld [vmem:[%s2931_s4 + $0x290] sm:$0xff]  ;;  %v334_v58 = vld [vmem:[%s2931_s4 + $0xa8] sm:$0xff]  ;;  %v336_v59 = vld [vmem:[%s2931_s4 + $0xb8] sm:$0xff]  ;;  %v1556_v62 = vpack.c.bf16 %v331_v54, %v329_v53 }
  0x2a   : > { %1615 = vmatprep.subr.bf16.mxu0 %v1614_v43  ;;  %v398_v60 = vld [vmem:[%s2931_s4 + $0x2a8] sm:$0xff]  ;;  %v400_v61 = vld [vmem:[%s2931_s4 + $0x2b8] sm:$0xff]  ;;  %v1620_v63 = vpack.c.bf16 %v395_v57, %v393_v55  ;;  %v1558_v0 = vpack.c.bf16 %v336_v59, %v334_v58  ;;  %v333_v1 = vld [vmem:[%s2931_s4 + $0xa0] sm:$0xff] }
  0x2b   : > { %v335_v2 = vld [vmem:[%s2931_s4 + $0xb0] sm:$0xff]  ;;  %v397_v3 = vld [vmem:[%s2931_s4 + $0x2a0] sm:$0xff]  ;;  %v1622_v4 = vpack.c.bf16 %v400_v61, %v398_v60  ;;  %v338_v6 = vld [vmem:[%s2931_s4 + $0xc8] sm:$0xff] }
  0x2c   : > { %1553 = vmatpush1.bf16.msra.mxu1 %v1552_v48  ;;  %v399_v5 = vld [vmem:[%s2931_s4 + $0x2b0] sm:$0xff]  ;;  %v340_v7 = vld [vmem:[%s2931_s4 + $0xd8] sm:$0xff]  ;;  %v402_v8 = vld [vmem:[%s2931_s4 + $0x2c8] sm:$0xff]  ;;  %v1560_v10 = vpack.c.bf16 %v335_v2, %v333_v1 }
  0x2d   : > { %1617 = vmatpush1.bf16.msra.mxu0 %v1616_v51  ;;  %1555 = vmatprep.subr.bf16.mxu1 %v1554_v52  ;;  %v404_v9 = vld [vmem:[%s2931_s4 + $0x2d8] sm:$0xff]  ;;  %v1624_v11 = vpack.c.bf16 %v399_v5, %v397_v3  ;;  %v1562_v12 = vpack.c.bf16 %v340_v7, %v338_v6  ;;  %v337_v13 = vld [vmem:[%s2931_s4 + $0xc0] sm:$0xff]  ;;  %v339_v14 = vld [vmem:[%s2931_s4 + $0xd0] sm:$0xff] }
  0x2e   : > { %1619 = vmatprep.subr.bf16.mxu0 %v1618_v56  ;;  %v401_v15 = vld [vmem:[%s2931_s4 + $0x2c0] sm:$0xff]  ;;  %v1626_v16 = vpack.c.bf16 %v404_v9, %v402_v8  ;;  %v403_v17 = vld [vmem:[%s2931_s4 + $0x2d0] sm:$0xff]  ;;  %v342_v18 = vld [vmem:[%s2931_s4 + $0xe8] sm:$0xff]  ;;  %v1564_v22 = vpack.c.bf16 %v339_v14, %v337_v13 }
  0x2f   : > { %v344_v19 = vld [vmem:[%s2931_s4 + $0xf8] sm:$0xff]  ;;  %v406_v20 = vld [vmem:[%s2931_s4 + $0x2e8] sm:$0xff]  ;;  %v1628_v23 = vpack.c.bf16 %v403_v17, %v401_v15  ;;  %v341_v25 = vld [vmem:[%s2931_s4 + $0xe0] sm:$0xff] }
  0x30   : > { %1557 = vmatpush1.bf16.msra.mxu1 %v1556_v62  ;;  %v408_v21 = vld [vmem:[%s2931_s4 + $0x2f8] sm:$0xff]  ;;  %v1566_v24 = vpack.c.bf16 %v344_v19, %v342_v18  ;;  %v343_v26 = vld [vmem:[%s2931_s4 + $0xf0] sm:$0xff]  ;;  %v405_v27 = vld [vmem:[%s2931_s4 + $0x2e0] sm:$0xff] }
  0x31   : > { %1621 = vmatpush1.bf16.msra.mxu0 %v1620_v63  ;;  %1559 = vmatprep.subr.bf16.mxu1 %v1558_v0  ;;  %v1630_v28 = vpack.c.bf16 %v408_v21, %v406_v20  ;;  %v407_v29 = vld [vmem:[%s2931_s4 + $0x2f0] sm:$0xff]  ;;  %v346_v30 = vld [vmem:[%s2931_s4 + $0x108] sm:$0xff]  ;;  %v348_v31 = vld [vmem:[%s2931_s4 + $0x118] sm:$0xff]  ;;  %v1568_v34 = vpack.c.bf16 %v343_v26, %v341_v25 }
  0x32   : > { %1623 = vmatprep.subr.bf16.mxu0 %v1622_v4  ;;  %v410_v32 = vld [vmem:[%s2931_s4 + $0x308] sm:$0xff]  ;;  %v412_v33 = vld [vmem:[%s2931_s4 + $0x318] sm:$0xff]  ;;  %v1632_v35 = vpack.c.bf16 %v407_v29, %v405_v27  ;;  %v1570_v36 = vpack.c.bf16 %v348_v31, %v346_v30  ;;  %v345_v37 = vld [vmem:[%s2931_s4 + $0x100] sm:$0xff] }
  0x33   : > { %v347_v38 = vld [vmem:[%s2931_s4 + $0x110] sm:$0xff]  ;;  %v409_v39 = vld [vmem:[%s2931_s4 + $0x300] sm:$0xff]  ;;  %v1634_v40 = vpack.c.bf16 %v412_v33, %v410_v32  ;;  %v350_v42 = vld [vmem:[%s2931_s4 + $0x128] sm:$0xff] }
  0x34   : > { %1561 = vmatpush1.bf16.msra.mxu1 %v1560_v10  ;;  %v411_v41 = vld [vmem:[%s2931_s4 + $0x310] sm:$0xff]  ;;  %v352_v43 = vld [vmem:[%s2931_s4 + $0x138] sm:$0xff]  ;;  %v414_v44 = vld [vmem:[%s2931_s4 + $0x328] sm:$0xff]  ;;  %v1572_v46 = vpack.c.bf16 %v347_v38, %v345_v37 }
  0x35   : > { %1625 = vmatpush1.bf16.msra.mxu0 %v1624_v11  ;;  %1563 = vmatprep.subr.bf16.mxu1 %v1562_v12  ;;  %v416_v45 = vld [vmem:[%s2931_s4 + $0x338] sm:$0xff]  ;;  %v1636_v47 = vpack.c.bf16 %v411_v41, %v409_v39  ;;  %v1574_v48 = vpack.c.bf16 %v352_v43, %v350_v42  ;;  %v349_v49 = vld [vmem:[%s2931_s4 + $0x120] sm:$0xff]  ;;  %v351_v50 = vld [vmem:[%s2931_s4 + $0x130] sm:$0xff] }
  0x36   : > { %1627 = vmatprep.subr.bf16.mxu0 %v1626_v16  ;;  %v413_v51 = vld [vmem:[%s2931_s4 + $0x320] sm:$0xff]  ;;  %v1638_v52 = vpack.c.bf16 %v416_v45, %v414_v44  ;;  %v415_v53 = vld [vmem:[%s2931_s4 + $0x330] sm:$0xff]  ;;  %v354_v54 = vld [vmem:[%s2931_s4 + $0x148] sm:$0xff]  ;;  %v1576_v58 = vpack.c.bf16 %v351_v50, %v349_v49 }
  0x37   : > { %v356_v55 = vld [vmem:[%s2931_s4 + $0x158] sm:$0xff]  ;;  %v418_v56 = vld [vmem:[%s2931_s4 + $0x348] sm:$0xff]  ;;  %v1640_v59 = vpack.c.bf16 %v415_v53, %v413_v51  ;;  %v353_v61 = vld [vmem:[%s2931_s4 + $0x140] sm:$0xff] }
  0x38   : > { %1565 = vmatpush1.bf16.msra.mxu1 %v1564_v22  ;;  %v420_v57 = vld [vmem:[%s2931_s4 + $0x358] sm:$0xff]  ;;  %v1578_v60 = vpack.c.bf16 %v356_v55, %v354_v54  ;;  %v355_v62 = vld [vmem:[%s2931_s4 + $0x150] sm:$0xff]  ;;  %v417_v63 = vld [vmem:[%s2931_s4 + $0x340] sm:$0xff] }
  0x39   : > { %1629 = vmatpush1.bf16.msra.mxu0 %v1628_v23  ;;  %1567 = vmatprep.subr.bf16.mxu1 %v1566_v24  ;;  %v1642_v0 = vpack.c.bf16 %v420_v57, %v418_v56  ;;  %v419_v1 = vld [vmem:[%s2931_s4 + $0x350] sm:$0xff]  ;;  %v358_v2 = vld [vmem:[%s2931_s4 + $0x168] sm:$0xff]  ;;  %v360_v3 = vld [vmem:[%s2931_s4 + $0x178] sm:$0xff]  ;;  %v1580_v6 = vpack.c.bf16 %v355_v62, %v353_v61 }
  0x3a   : > { %1631 = vmatprep.subr.bf16.mxu0 %v1630_v28  ;;  %v422_v4 = vld [vmem:[%s2931_s4 + $0x368] sm:$0xff]  ;;  %v424_v5 = vld [vmem:[%s2931_s4 + $0x378] sm:$0xff]  ;;  %v357_v7 = vld [vmem:[%s2931_s4 + $0x160] sm:$0xff]  ;;  %v1644_v8 = vpack.c.bf16 %v419_v1, %v417_v63  ;;  %v1582_v9 = vpack.c.bf16 %v360_v3, %v358_v2 }
  0x3b   : > { %v359_v10 = vld [vmem:[%s2931_s4 + $0x170] sm:$0xff]  ;;  %v421_v11 = vld [vmem:[%s2931_s4 + $0x360] sm:$0xff]  ;;  %v1646_v13 = vpack.c.bf16 %v424_v5, %v422_v4  ;;  %v362_v14 = vld [vmem:[%s2931_s4 + $0x188] sm:$0xff] }
  0x3c   : > { %1569 = vmatpush1.bf16.msra.mxu1 %v1568_v34  ;;  %v423_v12 = vld [vmem:[%s2931_s4 + $0x370] sm:$0xff]  ;;  %v364_v15 = vld [vmem:[%s2931_s4 + $0x198] sm:$0xff]  ;;  %v306_v16 = vld [vmem:[%s2085_s13 + $0x8] sm:$0xff]  ;;  %v1584_v20 = vpack.c.bf16 %v359_v10, %v357_v7 }
  0x3d   : > { %1633 = vmatpush1.bf16.msra.mxu0 %v1632_v35  ;;  %1571 = vmatprep.subr.bf16.mxu1 %v1570_v36  ;;  %v426_v17 = vld [vmem:[%s2931_s4 + $0x388] sm:$0xff]  ;;  %v428_v18 = vld [vmem:[%s2931_s4 + $0x398] sm:$0xff]  ;;  %v1648_v21 = vpack.c.bf16 %v423_v12, %v421_v11  ;;  %v1586_v22 = vpack.c.bf16 %v364_v15, %v362_v14  ;;  %v361_v23 = vld [vmem:[%s2931_s4 + $0x180] sm:$0xff] }
  0x3e   : > { %1635 = vmatprep.subr.bf16.mxu0 %v1634_v40  ;;  %517 = vmatprep.mubr.f32.mxu1 %v306_v16  ;;  %v308_v19 = vld [vmem:[%s2085_s13 + $0x18] sm:$0xff]  ;;  %v363_v24 = vld [vmem:[%s2931_s4 + $0x190] sm:$0xff]  ;;  %v425_v25 = vld [vmem:[%s2931_s4 + $0x380] sm:$0xff]  ;;  %v1650_v26 = vpack.c.bf16 %v428_v18, %v426_v17 }
  0x3f   : > { %594 = vmatprep.mubr.f32.mxu0 %v308_v19  ;;  %v427_v27 = vld [vmem:[%s2931_s4 + $0x390] sm:$0xff]  ;;  %v366_v28 = vld [vmem:[%s2931_s4 + $0x1a8] sm:$0xff]  ;;  %v368_v29 = vld [vmem:[%s2931_s4 + $0x1b8] sm:$0xff]  ;;  %v1588_v32 = vpack.c.bf16 %v363_v24, %v361_v23 }
  0x40   : > { %1573 = vmatpush1.bf16.msra.mxu1 %v1572_v46  ;;  %v430_v30 = vld [vmem:[%s2931_s4 + $0x3a8] sm:$0xff]  ;;  %v432_v31 = vld [vmem:[%s2931_s4 + $0x3b8] sm:$0xff]  ;;  %v1652_v33 = vpack.c.bf16 %v427_v27, %v425_v25  ;;  %v1590_v34 = vpack.c.bf16 %v368_v29, %v366_v28  ;;  %v365_v35 = vld [vmem:[%s2931_s4 + $0x1a0] sm:$0xff] }
  0x41   : > { %1637 = vmatpush1.bf16.msra.mxu0 %v1636_v47  ;;  %1575 = vmatprep.subr.bf16.mxu1 %v1574_v48  ;;  %v367_v36 = vld [vmem:[%s2931_s4 + $0x1b0] sm:$0xff]  ;;  %v429_v37 = vld [vmem:[%s2931_s4 + $0x3a0] sm:$0xff]  ;;  %v1654_v38 = vpack.c.bf16 %v432_v31, %v430_v30  ;;  %v370_v40 = vld [vmem:[%s2931_s4 + $0x1c8] sm:$0xff] }
  0x42   : > { %1639 = vmatprep.subr.bf16.mxu0 %v1638_v52  ;;  %v431_v39 = vld [vmem:[%s2931_s4 + $0x3b0] sm:$0xff]  ;;  %v372_v41 = vld [vmem:[%s2931_s4 + $0x1d8] sm:$0xff]  ;;  %v434_v42 = vld [vmem:[%s2931_s4 + $0x3c8] sm:$0xff]  ;;  %v1592_v44 = vpack.c.bf16 %v367_v36, %v365_v35 }
  0x43   : > { %v436_v43 = vld [vmem:[%s2931_s4 + $0x3d8] sm:$0xff]  ;;  %v1656_v45 = vpack.c.bf16 %v431_v39, %v429_v37  ;;  %v1594_v46 = vpack.c.bf16 %v372_v41, %v370_v40  ;;  %v369_v47 = vld [vmem:[%s2931_s4 + $0x1c0] sm:$0xff]  ;;  %v371_v48 = vld [vmem:[%s2931_s4 + $0x1d0] sm:$0xff]  ;;  %v1965_v39 = vmov 1966171168  }
  0x44   : > { %1577 = vmatpush1.bf16.msra.mxu1 %v1576_v58  ;;  %v433_v49 = vld [vmem:[%s2931_s4 + $0x3c0] sm:$0xff]  ;;  %v1658_v50 = vpack.c.bf16 %v436_v43, %v434_v42  ;;  %v435_v51 = vld [vmem:[%s2931_s4 + $0x3d0] sm:$0xff]  ;;  %v374_v52 = vld [vmem:[%s2931_s4 + $0x1e8] sm:$0xff]  ;;  %v1596_v56 = vpack.c.bf16 %v371_v48, %v369_v47  ;;  %v800_v40 = vunpack.c.l.s4 %v1965_v39 }
  0x45   : > { %1641 = vmatpush1.bf16.msra.mxu0 %v1640_v59  ;;  %1579 = vmatprep.subr.bf16.mxu1 %v1578_v60  ;;  %v376_v53 = vld [vmem:[%s2931_s4 + $0x1f8] sm:$0xff]  ;;  %v438_v54 = vld [vmem:[%s2931_s4 + $0x3e8] sm:$0xff]  ;;  %v1660_v57 = vpack.c.bf16 %v435_v51, %v433_v49  ;;  %v373_v59 = vld [vmem:[%s2931_s4 + $0x1e0] sm:$0xff] }
  0x46   : > { %1643 = vmatprep.subr.bf16.mxu0 %v1642_v0  ;;  %v440_v55 = vld [vmem:[%s2931_s4 + $0x3f8] sm:$0xff]  ;;  %v1598_v58 = vpack.c.bf16 %v376_v53, %v374_v52  ;;  %v375_v60 = vld [vmem:[%s2931_s4 + $0x1f0] sm:$0xff]  ;;  %v437_v62 = vld [vmem:[%s2931_s4 + $0x3e0] sm:$0xff]  ;;  %v801_v43 = vunpack.c.0.s8 %v800_v40 }
  0x47   : > { %v1662_v61 = vpack.c.bf16 %v440_v55, %v438_v54  ;;  %v439_v63 = vld [vmem:[%s2931_s4 + $0x3f0] sm:$0xff]  ;;  %v1600_v0 = vpack.c.bf16 %v375_v60, %v373_v59  ;;  %v305_v2 = vld [vmem:[%s2085_s13] sm:$0xff]  ;;  %v310_v4 = vld [vmem:[%s2085_s13 + $0x28] sm:$0xff] }
  0x48   : > { %1581 = vmatpush1.bf16.msra.mxu1 %v1580_v6  ;;  %v1664_v1 = vpack.c.bf16 %v439_v63, %v437_v62  ;;  %v307_v3 = vld [vmem:[%s2085_s13 + $0x10] sm:$0xff]  ;;  %v312_v5 = vld [vmem:[%s2085_s13 + $0x38] sm:$0xff]  ;;  %v309_v6 = vld [vmem:[%s2085_s13 + $0x20] sm:$0xff] }
  0x49   : > { %1645 = vmatpush1.bf16.msra.mxu0 %v1644_v8  ;;  %1583 = vmatprep.subr.bf16.mxu1 %v1582_v9  ;;  %v311_v7 = vld [vmem:[%s2085_s13 + $0x30] sm:$0xff]  ;;  %v1964_v8 = vmov 0.0   ;;  %v443_v9 = vlaneseq  ;;  %v441_v12 = vld [vmem:[%s2932_s5] sm:$0x3]  ;;  %v608_v37 = vld [vmem:[%s2929_s2 + $0x8] sm:$0xff] }
  0x4a   : > { %1647 = vmatprep.subr.bf16.mxu0 %v1646_v13  ;;  %v607_v35 = vld [vmem:[%s2929_s2] sm:$0xff] }
  0x4b   : > { %v444_v10 = vshrl.u32 %v443_v9, 7  ;;  %v721_v36 = vld [vmem:[%s2930_s3] sm:$0x1]  ;;  %vm816_vm1 = vcmp.lt.s32.totalorder %v443_v9, 256 }
  0x4c   : > { %1585 = vmatpush1.bf16.msra.mxu1 %v1584_v20 }
  0x4d   : > { %1649 = vmatpush1.bf16.msra.mxu0 %v1648_v21  ;;  %1587 = vmatprep.subr.bf16.mxu1 %v1586_v22  ;;  %v445_v11 = vsub.s32 0, %v444_v10  ;;  %v449_v13 = vsub.s32 1, %v444_v10  ;;  %v804_v47 = vsub.s32 %v801_v43, %v444_v10 }
  0x4e   : > { %1651 = vmatprep.subr.bf16.mxu0 %v1650_v26 }
  0x4f   : > { %v446_v14 = vrot.slane %v441_v12, %v445_v11  ;;  %v450_v15 = vrot.slane %v441_v12, %v449_v13 }
  0x50   : > { %1589 = vmatpush1.bf16.msra.mxu1 %v1588_v32 }
  0x51   : > { %1653 = vmatpush1.bf16.msra.mxu0 %v1652_v33  ;;  %1591 = vmatprep.subr.bf16.mxu1 %v1590_v34  ;;  %v610_v34 = vld [vmem:[%s2929_s2 + $0x18] sm:$0xff] }
  0x52   : > { %1655 = vmatprep.subr.bf16.mxu0 %v1654_v38  ;;  %v609_v38 = vld [vmem:[%s2929_s2 + $0x10] sm:$0xff] }
  0x54   : > { %1593 = vmatpush1.bf16.msra.mxu1 %v1592_v44 }
  0x55   : > { %1657 = vmatpush1.bf16.msra.mxu0 %v1656_v45  ;;  %1595 = vmatprep.subr.bf16.mxu1 %v1594_v46 }
  0x56   : > { %1659 = vmatprep.subr.bf16.mxu0 %v1658_v50 }
  0x58   : > { %1597 = vmatpush1.bf16.msra.mxu1 %v1596_v56 }
  0x59   : > { %1661 = vmatpush1.bf16.msra.mxu0 %v1660_v57  ;;  %1599 = vmatprep.subr.bf16.mxu1 %v1598_v58 }
  0x5a   : > { %1663 = vmatprep.subr.bf16.mxu0 %v1662_v61 }
  0x5c   : > { %1601 = vmatpush1.bf16.msra.mxu1 %v1600_v0 }
  0x5d   : > { %1665 = vmatpush1.bf16.msra.mxu0 %v1664_v1 }
  0x5f   : > { %518 = vmatmul.mubr.f32.vlgmr.msra.gmra.mrb[0].mxu1 %v305_v2 }
  0x60   : > { %595 = vmatmul.mubr.f32.vlgmr.msra.gmra.mrb[0].mxu0 %v307_v3  ;;  %523 = vmatprep.mubr.f32.mxu1 %v310_v4 }
  0x61   : > { %600 = vmatprep.mubr.f32.mxu0 %v312_v5 }
  0x63   : > { %524 = vmatmul.mubr.f32.gmra.mrb[2].mxu1 %v309_v6 }
  0x64   : > { %601 = vmatmul.mubr.f32.gmra.mrb[2].mxu0 %v311_v7  ;;  %706 = vmatprep.mubr.f32.mxu1 %v1964_v8 }
  0x65   : > { %688 = vmatprep.mubr.f32.mxu0 %v1964_v8 }
 0x132   : > { %v519_v16 = vpop.f32.mrb[0].mxu1 }
 0x133   : > { %v520_v17 = vadd.f32 %v519_v16, %v446_v14  ;;  %v521_v18 = vpop.f32.mrb[1].mxu1  ;;  %v596_v19 = vpop.f32.mrb[0].mxu0 }
 0x134   : > { %v522_v20 = vadd.f32 %v521_v18, %v450_v15  ;;  %v598_v21 = vpop.f32.mrb[1].mxu0 }
 0x135   : > { %v597_v22 = vadd.f32 %v596_v19, %v520_v17 }
 0x136   : > { %v599_v23 = vadd.f32 %v598_v21, %v522_v20  ;;  %v525_v24 = vpop.f32.mrb[2].mxu1 }
 0x137   : > { %v526_v25 = vadd.f32 %v525_v24, %v446_v14  ;;  %v527_v26 = vpop.f32.mrb[3].mxu1  ;;  %v602_v27 = vpop.f32.mrb[2].mxu0 }
 0x138   : > { %v528_v28 = vadd.f32 %v527_v26, %v450_v15  ;;  %v604_v29 = vpop.f32.mrb[3].mxu0 }
 0x139   : > { %v603_v30 = vadd.f32 %v602_v27, %v526_v25 }
 0x13a   : > { %v605_v31 = vadd.f32 %v604_v29, %v528_v28 }
 0x13b   : > { %v1668_v32 = vpack.c.bf16 %v603_v30, %v597_v22 }
 0x13c   : > { %v1666_v33 = vpack.c.bf16 %v605_v31, %v599_v23 }
 0x13e   : > { %1667 = vmatprep.subr.bf16.mxu0 %v1666_v33  ;;  %1682 = vmatprep.subr.bf16.mxu1 %v1666_v33 }
 0x13f   : > { %1669 = vmatpush1.bf16.msra.mxu0 %v1668_v32  ;;  %1683 = vmatpush1.bf16.msra.mxu1 %v1668_v32 }
 0x140   : > { %1671 = vmatprep.subr.bf16.mxu1 %v1666_v33 }
 0x142   : > { %1511 = vmatmul.mubr.msk.f32.vlgmr.msra.gmra.mrb[4].mxu1 %vm611_vm0, %v610_v34  ;;  %1508 = vmatmul.mubr.msk.f32.vlgmr.msra.gmra.mrb[4].mxu0 %vm611_vm0, %v607_v35 }
 0x143   : > { %1673 = vmatpush1.bf16.msra.mxu1 %v1668_v32  ;;  %789 = vmatprep.mubr.f32.mxu1 %v1964_v8 }
 0x144   : > { %694 = vmatprep.mubr.f32.mxu0 %v1964_v8 }
 0x146   : > { %1512 = vmatmul.mubr.msk.f32.vlgmr.msra.gmra.mrb[6].mxu1 %vm611_vm0, %v721_v36  ;;  %1509 = vmatmul.mubr.msk.f32.gmra.mrb[6].mxu0 %vm611_vm0, %v608_v37 }
 0x147   : > { %700 = vmatprep.mubr.f32.mxu0 %v1964_v8 }
 0x14a   : > { %1510 = vmatmul.mubr.msk.f32.gmra.mrb[8].mxu0 %vm611_vm0, %v609_v38 }
 0x215   : > { %v708_v41 = vpop.f32.mrb[4].mxu1  ;;  %v690_v42 = vpop.f32.mrb[4].mxu0 }
 0x216   : > { %719 = vst [vmem:[#allocation2 + $0x30] sm:$0xff] %v708_v41  ;;  %v710_v44 = vpop.f32.mrb[5].mxu1  ;;  %713 = vst [vmem:[#allocation2] sm:$0xff] %v690_v42  ;;  %v692_v45 = vpop.f32.mrb[5].mxu0 }
 0x217   : > { %720 = vst [vmem:[#allocation2 + $0x38] sm:$0xff] %v710_v44  ;;  %714 = vst [vmem:[#allocation2 + $0x8] sm:$0xff] %v692_v45 }
 0x219   : > { %v791_v46 = vpop.f32.mrb[6].mxu1  ;;  %v696_v48 = vpop.f32.mrb[6].mxu0 }
 0x21a   : > { %v793_v49 = vpop.f32.mrb[7].mxu1  ;;  %715 = vst [vmem:[#allocation2 + $0x10] sm:$0xff] %v696_v48  ;;  %v698_v50 = vpop.f32.mrb[7].mxu0 }
 0x21b   : > { %v798_v51 = vcombine.low %v791_v46, %v793_v49  ;;  %716 = vst [vmem:[#allocation2 + $0x18] sm:$0xff] %v698_v50 }
 0x21d   : > { %v805_v52 = vrot.slane %v798_v51, %v804_v47  ;;  %v702_v53 = vpop.f32.mrb[8].mxu0 }
 0x21e   : > { %717 = vst [vmem:[#allocation2 + $0x20] sm:$0xff] %v702_v53  ;;  %v704_v54 = vpop.f32.mrb[9].mxu0 }
 0x21f   : > { %v812_v55 = vrot.slane %v805_v52, %v804_v47  ;;  %718 = vst [vmem:[#allocation2 + $0x28] sm:$0xff] %v704_v54 }
 0x221   : > { %818 = vst.msk [vmem:[#allocation3] sm:$0x3] %vm816_vm1, %v812_v55 }
 0x222 PF: > { %v836_v56 = vld [vmem:[#allocation2 + $0x8] sm:$0xff]  ;;  %v838_v57 = vld [vmem:[#allocation2 + $0x18] sm:$0xff]  ;;  %v835_v58 = vld [vmem:[#allocation2] sm:$0xff]  ;;  %v1966_v63 = vmov 0.0   ;;  %vm855_vm2 = vcmask 261120   ;;  %v845_v21 = vlaneseq  ;;  %s1532_s8 = sshll.u32 %s1950_s25, 6 }
 0x223   : > { %v1674_v59 = vpack.c.bf16 %v838_v57, %v836_v56  ;;  %v837_v60 = vld [vmem:[#allocation2 + $0x10] sm:$0xff]  ;;  %v842_v62 = vld [vmem:[#allocation2 + $0x38] sm:$0xff]  ;;  %968 = vmatprep.mubr.f32.mxu0 %v1966_v63  ;;  %1016 = vmatprep.mubr.f32.mxu1 %v1966_v63  ;;  %v819_v5 = vld [vmem:[%s2090_s27] sm:$0xff]  ;;  %s1402_s18 = sshll.u32 %s2092_s26, 4  ;;  %s2946_s15 = sand.u32 1, %s1938_s22   ;;  %s2867_s18 = int_to_ptr.vmem [resolvable:$true] %s1402_s18 }
 0x224   : > { %v1676_v0 = vpack.c.bf16 %v837_v60, %v835_v58  ;;  %v841_v3 = vld [vmem:[#allocation2 + $0x30] sm:$0xff]  ;;  %v827_v6 = vld [vmem:[%s2090_s27 + $0x40] sm:$0xff]  ;;  %v820_v7 = vld [vmem:[%s2090_s27 + $0x8] sm:$0xff]  ;;  %v846_v22 = vshrl.u32 %v845_v21, 7  ;;  %s2875_s16 = scalar_lea.sflag [#allocation5], %s2946_s15  ;;  %s1868_s12 = scalar_lea.vmem %s2867_s18, 4096 }
 0x225   : > { %v839_v2 = vld [vmem:[#allocation2 + $0x20] sm:$0xff]  ;;  %1675 = vmatprep.subr.bf16.mxu0 %v1674_v59  ;;  %1692 = vmatprep.subr.bf16.mxu1 %v1674_v59  ;;  %v828_v8 = vld [vmem:[%s2090_s27 + $0x48] sm:$0xff]  ;;  %v821_v9 = vld [vmem:[%s2090_s27 + $0x10] sm:$0xff]  ;;  %p1869_p1 = scmp.ne.s32.totalorder %s2867_s18, %s1868_s12  ;;  %s1967_s14 = smov [#allocation4]  }
 0x226   : > { %v840_v61 = vld [vmem:[#allocation2 + $0x28] sm:$0xff]  ;;  %1677 = vmatpush1.bf16.msra.mxu0 %v1676_v0  ;;  %1694 = vmatpush1.bf16.msra.mxu1 %v1676_v0  ;;  %v1680_v4 = vpack.c.bf16 %v841_v3, %v839_v2  ;;  %v829_v10 = vld [vmem:[%s2090_s27 + $0x50] sm:$0xff]  ;;  %v822_v11 = vld [vmem:[%s2090_s27 + $0x18] sm:$0xff]  ;;  %v847_v23 = vsub.s32 0, %v846_v22  ;;  %v851_v25 = vsub.s32 1, %v846_v22  ;;  %s1872_s17 = sshll.u32 %s1967_s14, 4  ;;  %s1873_s17 = int_to_ptr.vmem [resolvable:$false] %s1872_s17 }
 0x227   : > { %v1678_v1 = vpack.c.bf16 %v842_v62, %v840_v61  ;;  %v830_v12 = vld [vmem:[%s2090_s27 + $0x58] sm:$0xff]  ;;  %v823_v13 = vld [vmem:[%s2090_s27 + $0x20] sm:$0xff]  ;;  %v824_v15 = vld [vmem:[%s2090_s27 + $0x28] sm:$0xff]  ;;  %p1870_p2 = pnand %p1869_p1, %p2056_p3  ;;  %s1874_s19 = scalar_lea.vmem %s1873_s17, 8192 }
 0x228   : > { %v831_v14 = vld [vmem:[%s2090_s27 + $0x60] sm:$0xff]  ;;  %v832_v16 = vld [vmem:[%s2090_s27 + $0x68] sm:$0xff]  ;;  %v825_v17 = vld [vmem:[%s2090_s27 + $0x30] sm:$0xff]  ;;  %p1875_p5 = scmp.lt.s32.totalorder %s2867_s18, %s1873_s17  ;;  %p1876_p6 = scmp.lt.s32.totalorder %s1874_s19, %s1868_s12 }
 0x229   : > { %1679 = vmatprep.subr.bf16.mxu0 %v1678_v1  ;;  %1693 = vmatprep.subr.bf16.mxu1 %v1678_v1  ;;  %v833_v18 = vld [vmem:[%s2090_s27 + $0x70] sm:$0xff]  ;;  %v826_v19 = vld [vmem:[%s2090_s27 + $0x38] sm:$0xff]  ;;  %v843_v24 = vld [vmem:[#allocation3] sm:$0x3]  ;;  %p1871_p4 = pneg %p1870_p2 }
 0x22a   : > { %1681 = vmatpush1.bf16.msra.mxu0 %v1680_v4  ;;  %1695 = vmatpush1.bf16.msra.mxu1 %v1680_v4  ;;  %v834_v20 = vld [vmem:[%s2090_s27 + $0x78] sm:$0xff]  ;;  %v2539_v26 = vrot.slane %v843_v24, %v847_v23  ;;  %v2541_v27 = vrot.slane %v843_v24, %v851_v25  ;;  %s1537_s27 = sshll.u32 %s1946_s24, 5  ;;  %p1877_p7 = por %p1876_p6, %p1875_p5 }
 0x22b   : > { %s1399_s24 = sadd.s32 %s1537_s27, %s1532_s8 }
 0x22c   : > { %s1533_s25 = sshll.u32 %s1399_s24, 7  ;;  %p1878_p9 = pnand %p1877_p7, %p1871_p4 }
 0x22d   : > { %1513 = vmatmul.mubr.msk.f32.vlgmr.msra.gmra.mrb[0].mxu0 %vm855_vm2, %v819_v5  ;;  %1521 = vmatmul.mubr.msk.f32.vlgmr.msra.gmra.mrb[0].mxu1 %vm855_vm2, %v827_v6  ;;  %s2865_s13 = scalar_lea.hbm %s2933_s6, %s1533_s25 }
 0x22e   : > { %974 = vmatprep.mubr.f32.mxu0 %v1966_v63  ;;  %1022 = vmatprep.mubr.f32.mxu1 %v1966_v63 }
 0x231   : > { %1514 = vmatmul.mubr.msk.f32.gmra.mrb[2].mxu0 %vm855_vm2, %v820_v7  ;;  %1522 = vmatmul.mubr.msk.f32.gmra.mrb[2].mxu1 %vm855_vm2, %v828_v8 }
 0x232   : > { %980 = vmatprep.mubr.f32.mxu0 %v1966_v63  ;;  %1028 = vmatprep.mubr.f32.mxu1 %v1966_v63 }
 0x235   : > { %1515 = vmatmul.mubr.msk.f32.gmra.mrb[4].mxu0 %vm855_vm2, %v821_v9  ;;  %1523 = vmatmul.mubr.msk.f32.gmra.mrb[4].mxu1 %vm855_vm2, %v829_v10 }
 0x236   : > { %986 = vmatprep.mubr.f32.mxu0 %v1966_v63  ;;  %1034 = vmatprep.mubr.f32.mxu1 %v1966_v63 }
 0x239   : > { %1516 = vmatmul.mubr.msk.f32.gmra.mrb[6].mxu0 %vm855_vm2, %v822_v11  ;;  %1524 = vmatmul.mubr.msk.f32.gmra.mrb[6].mxu1 %vm855_vm2, %v830_v12 }
 0x23a   : > { %992 = vmatprep.mubr.f32.mxu0 %v1966_v63  ;;  %1040 = vmatprep.mubr.f32.mxu1 %v1966_v63 }
 0x23d   : > { %1517 = vmatmul.mubr.msk.f32.gmra.mrb[8].mxu0 %vm855_vm2, %v823_v13  ;;  %1525 = vmatmul.mubr.msk.f32.gmra.mrb[8].mxu1 %vm855_vm2, %v831_v14 }
 0x23e   : > { %998 = vmatprep.mubr.f32.mxu0 %v1966_v63  ;;  %1046 = vmatprep.mubr.f32.mxu1 %v1966_v63 }
 0x241   : > { %1518 = vmatmul.mubr.msk.f32.gmra.mrb[10].mxu0 %vm855_vm2, %v824_v15  ;;  %1526 = vmatmul.mubr.msk.f32.gmra.mrb[10].mxu1 %vm855_vm2, %v832_v16 }
 0x242   : > { %1004 = vmatprep.mubr.f32.mxu0 %v1966_v63  ;;  %1052 = vmatprep.mubr.f32.mxu1 %v1966_v63 }
 0x245   : > { %1519 = vmatmul.mubr.msk.f32.gmra.mrb[12].mxu0 %vm855_vm2, %v825_v17  ;;  %1527 = vmatmul.mubr.msk.f32.gmra.mrb[12].mxu1 %vm855_vm2, %v833_v18 }
 0x246   : > { %1010 = vmatprep.mubr.f32.mxu0 %v1966_v63  ;;  %1058 = vmatprep.mubr.f32.mxu1 %v1966_v63 }
 0x249   : > { %1520 = vmatmul.mubr.msk.f32.gmra.mrb[14].mxu0 %vm855_vm2, %v826_v19  ;;  %1528 = vmatmul.mubr.msk.f32.gmra.mrb[14].mxu1 %vm855_vm2, %v834_v20 }
 0x300   : > { %v970_v28 = vpop.f32.mrb[0].mxu0  ;;  %v1018_v29 = vpop.f32.mrb[0].mxu1 }
 0x301   : > { %v2544_v30 = vadd.f32 %v970_v28, %v2539_v26  ;;  %v972_v31 = vpop.f32.mrb[1].mxu0  ;;  %v1020_v32 = vpop.f32.mrb[1].mxu1  ;;  %v2550_v34 = vadd.f32 %v1018_v29, %v2539_v26 }
 0x302   : > { %v2547_v33 = vadd.f32 %v972_v31, %v2541_v27  ;;  %v2553_v35 = vadd.f32 %v1020_v32, %v2541_v27 }
 0x304   : > { %v1024_v36 = vpop.f32.mrb[2].mxu1  ;;  %v976_v37 = vpop.f32.mrb[2].mxu0  ;;  %v1065_v38 = vmax.f32 %v2544_v30, %v2547_v33  ;;  %v1089_v45 = vmax.f32 %v2550_v34, %v2553_v35 }
 0x305   : > { %v2558_v39 = vadd.f32 %v1024_v36, %v2539_v26  ;;  %v1026_v40 = vpop.f32.mrb[3].mxu1  ;;  %v978_v41 = vpop.f32.mrb[3].mxu0  ;;  %v2564_v43 = vadd.f32 %v976_v37, %v2539_v26 }
 0x306   : > { %v2561_v42 = vadd.f32 %v1026_v40, %v2541_v27  ;;  %1066 = vmax.xlane.f32.xlu0 %v1065_v38  ;;  %v2567_v44 = vadd.f32 %v978_v41, %v2541_v27 }
 0x308   : > { %v982_v46 = vpop.f32.mrb[4].mxu0  ;;  %v1092_v47 = vmax.f32 %v2558_v39, %v2561_v42  ;;  %v1030_v48 = vpop.f32.mrb[4].mxu1  ;;  %v1068_v55 = vmax.f32 %v2564_v43, %v2567_v44 }
 0x309   : > { %v2574_v49 = vadd.f32 %v982_v46, %v2539_v26  ;;  %v984_v50 = vpop.f32.mrb[5].mxu0  ;;  %v2577_v51 = vadd.f32 %v1030_v48, %v2539_v26  ;;  %v1032_v52 = vpop.f32.mrb[5].mxu1 }
 0x30a   : > { %v2580_v53 = vadd.f32 %v984_v50, %v2541_v27  ;;  %1093 = vmax.xlane.f32.xlu1 %v1092_v47  ;;  %1090 = vmax.xlane.f32.xlu0 %v1089_v45  ;;  %v2583_v54 = vadd.f32 %v1032_v52, %v2541_v27 }
 0x30c   : > { %v988_v56 = vpop.f32.mrb[6].mxu0  ;;  %v1071_v57 = vmax.f32 %v2574_v49, %v2580_v53  ;;  %v1036_v58 = vpop.f32.mrb[6].mxu1  ;;  %v1095_v62 = vmax.f32 %v2577_v51, %v2583_v54 }
 0x30d   : > { %v2590_v59 = vadd.f32 %v988_v56, %v2539_v26  ;;  %v990_v60 = vpop.f32.mrb[7].mxu0  ;;  %v1038_v61 = vpop.f32.mrb[7].mxu1  ;;  %v2598_v0 = vadd.f32 %v1036_v58, %v2539_v26 }
 0x30e   : > { %v2595_v63 = vadd.f32 %v990_v60, %v2541_v27  ;;  %1072 = vmax.xlane.f32.xlu1 %v1071_v57  ;;  %1069 = vmax.xlane.f32.xlu0 %v1068_v55  ;;  %v2601_v1 = vadd.f32 %v1038_v61, %v2541_v27 }
 0x310   : > { %v994_v2 = vpop.f32.mrb[8].mxu0  ;;  %v1074_v3 = vmax.f32 %v2590_v59, %v2595_v63  ;;  %v1042_v4 = vpop.f32.mrb[8].mxu1  ;;  %v1098_v11 = vmax.f32 %v2598_v0, %v2601_v1 }
 0x311   : > { %v2606_v5 = vadd.f32 %v994_v2, %v2539_v26  ;;  %v996_v6 = vpop.f32.mrb[9].mxu0  ;;  %v2609_v7 = vadd.f32 %v1042_v4, %v2539_v26  ;;  %v1044_v8 = vpop.f32.mrb[9].mxu1 }
 0x312   : > { %v2612_v9 = vadd.f32 %v996_v6, %v2541_v27  ;;  %1075 = vmax.xlane.f32.xlu1 %v1074_v3  ;;  %1096 = vmax.xlane.f32.xlu0 %v1095_v62  ;;  %v2615_v10 = vadd.f32 %v1044_v8, %v2541_v27 }
 0x314   : > { %v1000_v12 = vpop.f32.mrb[10].mxu0  ;;  %v1077_v13 = vmax.f32 %v2606_v5, %v2612_v9  ;;  %v1048_v14 = vpop.f32.mrb[10].mxu1  ;;  %v1101_v18 = vmax.f32 %v2609_v7, %v2615_v10 }
 0x315   : > { %v2622_v15 = vadd.f32 %v1000_v12, %v2539_v26  ;;  %v1002_v16 = vpop.f32.mrb[11].mxu0  ;;  %v1050_v17 = vpop.f32.mrb[11].mxu1  ;;  %v2630_v20 = vadd.f32 %v1048_v14, %v2539_v26 }
 0x316   : > { %v2627_v19 = vadd.f32 %v1002_v16, %v2541_v27  ;;  %1099 = vmax.xlane.f32.xlu1 %v1098_v11  ;;  %1078 = vmax.xlane.f32.xlu0 %v1077_v13  ;;  %v2633_v21 = vadd.f32 %v1050_v17, %v2541_v27 }
 0x318   : > { %v1006_v22 = vpop.f32.mrb[12].mxu0  ;;  %v1080_v23 = vmax.f32 %v2622_v15, %v2627_v19  ;;  %v1054_v24 = vpop.f32.mrb[12].mxu1  ;;  %v1104_v37 = vmax.f32 %v2630_v20, %v2633_v21 }
 0x319   : > { %v2638_v25 = vadd.f32 %v1006_v22, %v2539_v26  ;;  %v1008_v28 = vpop.f32.mrb[13].mxu0  ;;  %v2641_v29 = vadd.f32 %v1054_v24, %v2539_v26  ;;  %v1056_v31 = vpop.f32.mrb[13].mxu1 }
 0x31a   : > { %v2644_v32 = vadd.f32 %v1008_v28, %v2541_v27  ;;  %1081 = vmax.xlane.f32.xlu1 %v1080_v23  ;;  %1102 = vmax.xlane.f32.xlu0 %v1101_v18  ;;  %v2647_v36 = vadd.f32 %v1056_v31, %v2541_v27 }
 0x31c   : > { %v1012_v38 = vpop.f32.mrb[14].mxu0  ;;  %v1083_v40 = vmax.f32 %v2638_v25, %v2644_v32  ;;  %v1060_v41 = vpop.f32.mrb[14].mxu1  ;;  %v1107_v48 = vmax.f32 %v2641_v29, %v2647_v36 }
 0x31d   : > { %v2654_v45 = vadd.f32 %v1012_v38, %v2539_v26  ;;  %v1014_v46 = vpop.f32.mrb[15].mxu0  ;;  %v1062_v47 = vpop.f32.mrb[15].mxu1  ;;  %v2662_v52 = vadd.f32 %v1060_v41, %v2539_v26 }
 0x31e   : > { %v2659_v50 = vadd.f32 %v1014_v46, %v2541_v27  ;;  %1105 = vmax.xlane.f32.xlu1 %v1104_v37  ;;  %1084 = vmax.xlane.f32.xlu0 %v1083_v40  ;;  %v2665_v55 = vadd.f32 %v1062_v47, %v2541_v27 }
 0x320   : > { %v1086_v56 = vmax.f32 %v2654_v45, %v2659_v50  ;;  %v1110_v57 = vmax.f32 %v2662_v52, %v2665_v55 }
 0x322   : > { %1087 = vmax.xlane.f32.xlu1 %v1086_v56  ;;  %1108 = vmax.xlane.f32.xlu0 %v1107_v48 }
 0x326   : > { %1111 = vmax.xlane.f32.xlu1 %v1110_v57 }
 0x393   : > { %v1067_v58 = vpop.xlane.xlu0 %1066 }
 0x394   : > { %v1113_v60 = vsub.f32 %v2544_v30, %v1067_v58  ;;  %v1114_v61 = vsub.f32 %v2547_v33, %v1067_v58 }
 0x396   : > { %v1145_v62 = vmul.f32 1.442695, %v1113_v60  ;;  %v1147_v26 = vmul.f32 1.442695, %v1114_v61 }
 0x397   : > { %v1094_v2 = vpop.xlane.xlu1 %1093  ;;  %v1091_v3 = vpop.xlane.xlu0 %1090 }
 0x398   : > { %1772 = vpow2.f32 %v1145_v62  ;;  %v1131_v27 = vsub.f32 %v2558_v39, %v1094_v2  ;;  %v1132_v4 = vsub.f32 %v2561_v42, %v1094_v2  ;;  %v1129_v6 = vsub.f32 %v2550_v34, %v1091_v3 }
 0x399   : > { %1774 = vpow2.f32 %v1147_v26  ;;  %v1130_v8 = vsub.f32 %v2553_v35, %v1091_v3 }
 0x39a   : > { %v1181_v11 = vmul.f32 1.442695, %v1131_v27  ;;  %v1183_v12 = vmul.f32 1.442695, %v1132_v4  ;;  %v1177_v13 = vmul.f32 1.442695, %v1129_v6 }
 0x39b   : > { %v1179_v30 = vmul.f32 1.442695, %v1130_v8  ;;  %v1073_v14 = vpop.xlane.xlu1 %1072  ;;  %v1070_v33 = vpop.xlane.xlu0 %1069 }
 0x39c   : > { %1776 = vpow2.f32 %v1181_v11  ;;  %v1117_v16 = vsub.f32 %v2574_v49, %v1073_v14  ;;  %v1118_v17 = vsub.f32 %v2580_v53, %v1073_v14  ;;  %v1115_v39 = vsub.f32 %v2564_v43, %v1070_v33 }
 0x39d   : > { %1778 = vpow2.f32 %v1183_v12  ;;  %v1116_v42 = vsub.f32 %v2567_v44, %v1070_v33 }
 0x39e   : > { %1780 = vpow2.f32 %v1177_v13  ;;  %v1153_v34 = vmul.f32 1.442695, %v1117_v16  ;;  %v1155_v18 = vmul.f32 1.442695, %v1118_v17  ;;  %v1149_v35 = vmul.f32 1.442695, %v1115_v39 }
 0x39f   : > { %1782 = vpow2.f32 %v1179_v30  ;;  %v1151_v22 = vmul.f32 1.442695, %v1116_v42  ;;  %v1076_v23 = vpop.xlane.xlu1 %1075  ;;  %v1097_v24 = vpop.xlane.xlu0 %1096 }
 0x3a0   : > { %1784 = vpow2.f32 %v1153_v34  ;;  %v1119_v28 = vsub.f32 %v2590_v59, %v1076_v23  ;;  %v1120_v49 = vsub.f32 %v2595_v63, %v1076_v23  ;;  %v1133_v53 = vsub.f32 %v2577_v51, %v1097_v24 }
 0x3a1   : > { %1786 = vpow2.f32 %v1155_v18  ;;  %v1134_v43 = vsub.f32 %v2583_v54, %v1097_v24 }
 0x3a2   : > { %v2685_v31 = vpop.eup %1772  ;;  %1788 = vpow2.f32 %v1149_v35  ;;  %v1157_v44 = vmul.f32 1.442695, %v1119_v28  ;;  %v1185_v37 = vmul.f32 1.442695, %v1133_v53  ;;  %v1159_v47 = vmul.f32 1.442695, %v1120_v49 }
 0x3a3   : > { %v2687_v38 = vpop.eup %1774  ;;  %1790 = vpow2.f32 %v1151_v22  ;;  %v1187_v40 = vmul.f32 1.442695, %v1134_v43  ;;  %v1100_v41 = vpop.xlane.xlu1 %1099 }
 0x3a4   : > { %v1079_v46 = vpop.xlane.xlu0 %1078  ;;  %v1135_v59 = vsub.f32 %v2598_v0, %v1100_v41  ;;  %v1136_v63 = vsub.f32 %v2601_v1, %v1100_v41  ;;  %1792 = vpow2.f32 %v1157_v44  ;;  %v1209_v48 = vadd.f32 %v2687_v38, %v2685_v31 }
 0x3a5   : > { %v1121_v51 = vsub.f32 %v2606_v5, %v1079_v46  ;;  %v1122_v54 = vsub.f32 %v2612_v9, %v1079_v46  ;;  %1794 = vpow2.f32 %v1185_v37 }
 0x3a6   : > { %v2695_v56 = vpop.eup %1776  ;;  %v1189_v57 = vmul.f32 1.442695, %v1135_v59  ;;  %1796 = vpow2.f32 %v1187_v40  ;;  %1210 = vadd.xlane.f32.xlu0 %v1209_v48  ;;  %v1191_v5 = vmul.f32 1.442695, %v1136_v63 }
 0x3a7   : > { %v1161_v58 = vmul.f32 1.442695, %v1121_v51  ;;  %v2697_v60 = vpop.eup %1778  ;;  %v1163_v61 = vmul.f32 1.442695, %v1122_v54  ;;  %v1082_v0 = vpop.xlane.xlu1 %1081  ;;  %1798 = vpow2.f32 %v1159_v47 }
 0x3a8   : > { %v1103_v1 = vpop.xlane.xlu0 %1102  ;;  %v2699_v62 = vpop.eup %1780  ;;  %v1123_v9 = vsub.f32 %v2622_v15, %v1082_v0  ;;  %1800 = vpow2.f32 %v1189_v57  ;;  %v1124_v3 = vsub.f32 %v2627_v19, %v1082_v0  ;;  %v1236_v40 = vadd.f32 %v2697_v60, %v2695_v56 }
 0x3a9   : > { %v1137_v26 = vsub.f32 %v2609_v7, %v1103_v1  ;;  %v2703_v2 = vpop.eup %1782  ;;  %v1138_v27 = vsub.f32 %v2615_v10, %v1103_v1  ;;  %1802 = vpow2.f32 %v1161_v58 }
 0x3aa   : > { %v2707_v4 = vpop.eup %1784  ;;  %1804 = vpow2.f32 %v1163_v61  ;;  %v1233_v15 = vadd.f32 %v2703_v2, %v2699_v62  ;;  %v1165_v30 = vmul.f32 1.442695, %v1123_v9  ;;  %v1167_v33 = vmul.f32 1.442695, %v1124_v3 }
 0x3ab   : > { %v1193_v6 = vmul.f32 1.442695, %v1137_v26  ;;  %v2709_v8 = vpop.eup %1786  ;;  %v1195_v11 = vmul.f32 1.442695, %v1138_v27  ;;  %v1106_v12 = vpop.xlane.xlu1 %1105  ;;  %1806 = vpow2.f32 %v1191_v5 }
 0x3ac   : > { %v1085_v7 = vpop.xlane.xlu0 %1084  ;;  %v2713_v13 = vpop.eup %1788  ;;  %v1139_v19 = vsub.f32 %v2630_v20, %v1106_v12  ;;  %1234 = vadd.xlane.f32.xlu0 %v1233_v15  ;;  %v1140_v16 = vsub.f32 %v2633_v21, %v1106_v12  ;;  %v1215_v39 = vadd.f32 %v2709_v8, %v2707_v4 }
 0x3ad   : > { %v1125_v10 = vsub.f32 %v2638_v25, %v1085_v7  ;;  %v2717_v14 = vpop.eup %1790  ;;  %v1126_v17 = vsub.f32 %v2644_v32, %v1085_v7  ;;  %1808 = vpow2.f32 %v1193_v6 }
 0x3ae   : > { %v2723_v34 = vpop.eup %1792  ;;  %1810 = vpow2.f32 %v1195_v11  ;;  %v1212_v20 = vadd.f32 %v2717_v14, %v2713_v13  ;;  %v1197_v21 = vmul.f32 1.442695, %v1139_v19  ;;  %v1199_v24 = vmul.f32 1.442695, %v1140_v16 }
 0x3af   : > { %v1169_v42 = vmul.f32 1.442695, %v1125_v10  ;;  %v1171_v18 = vmul.f32 1.442695, %v1126_v17  ;;  %v1088_v25 = vpop.xlane.xlu1 %1087  ;;  %v2727_v22 = vpop.eup %1794  ;;  %1812 = vpow2.f32 %v1165_v30 }
 0x3b0   : > { %v1109_v35 = vpop.xlane.xlu0 %1108  ;;  %v2730_v23 = vpop.eup %1796  ;;  %1814 = vpow2.f32 %v1167_v33  ;;  %1216 = vadd.xlane.f32.xlu0 %v1215_v39  ;;  %1213 = vadd.xlane.f32.xlu1 %v1212_v20  ;;  %v1127_v28 = vsub.f32 %v2654_v45, %v1088_v25  ;;  %v1128_v43 = vsub.f32 %v2659_v50, %v1088_v25 }
 0x3b1   : > { %v1141_v32 = vsub.f32 %v2641_v29, %v1109_v35  ;;  %v1142_v49 = vsub.f32 %v2647_v36, %v1109_v35  ;;  %v2734_v53 = vpop.eup %1798  ;;  %1816 = vpow2.f32 %v1169_v42  ;;  %v1239_v41 = vadd.f32 %v2730_v23, %v2727_v22 }
 0x3b2   : > { %v2737_v37 = vpop.eup %1800  ;;  %1818 = vpow2.f32 %v1171_v18  ;;  %v1173_v47 = vmul.f32 1.442695, %v1127_v28  ;;  %v1175_v63 = vmul.f32 1.442695, %v1128_v43  ;;  %v1218_v48 = vadd.f32 %v2734_v53, %v2723_v34 }
 0x3b3   : > { %v1201_v44 = vmul.f32 1.442695, %v1141_v32  ;;  %v1203_v29 = vmul.f32 1.442695, %v1142_v49  ;;  %v1112_v46 = vpop.xlane.xlu1 %1111  ;;  %v2743_v45 = vpop.eup %1802  ;;  %1820 = vpow2.f32 %v1197_v21 }
 0x3b4   : > { %v2745_v36 = vpop.eup %1804  ;;  %1822 = vpow2.f32 %v1199_v24  ;;  %1237 = vadd.xlane.f32.xlu1 %v1236_v40  ;;  %1240 = vadd.xlane.f32.xlu0 %v1239_v41  ;;  %v1143_v50 = vsub.f32 %v2662_v52, %v1112_v46  ;;  %v1144_v51 = vsub.f32 %v2665_v55, %v1112_v46 }
 0x3b5   : > { %v2748_v59 = vpop.eup %1806  ;;  %1824 = vpow2.f32 %v1201_v44  ;;  %v1221_v54 = vadd.f32 %v2745_v36, %v2743_v45 }
 0x3b6   : > { %1826 = vpow2.f32 %v1203_v29  ;;  %v1205_v61 = vmul.f32 1.442695, %v1143_v50  ;;  %v1207_v0 = vmul.f32 1.442695, %v1144_v51  ;;  %v1242_v5 = vadd.f32 %v2748_v59, %v2737_v37 }
 0x3b7   : > { %v2755_v57 = vpop.eup %1808  ;;  %1828 = vpow2.f32 %v1173_v47 }
 0x3b8   : > { %v2757_v58 = vpop.eup %1810  ;;  %1219 = vadd.xlane.f32.xlu1 %v1218_v48  ;;  %1222 = vadd.xlane.f32.xlu0 %v1221_v54  ;;  %1830 = vpow2.f32 %v1175_v63 }
 0x3b9   : > { %v2759_v52 = vpop.eup %1812  ;;  %v1245_v55 = vadd.f32 %v2757_v58, %v2755_v57  ;;  %1832 = vpow2.f32 %v1205_v61 }
 0x3ba   : > { %v2763_v1 = vpop.eup %1814  ;;  %1834 = vpow2.f32 %v1207_v0 }
 0x3bb   : > { %v2767_v9 = vpop.eup %1816  ;;  %v1224_v11 = vadd.f32 %v2763_v1, %v2759_v52 }
 0x3bc   : > { %v2769_v26 = vpop.eup %1818  ;;  %1243 = vadd.xlane.f32.xlu1 %v1242_v5  ;;  %1246 = vadd.xlane.f32.xlu0 %v1245_v55 }
 0x3bd   : > { %v2771_v3 = vpop.eup %1820  ;;  %v1227_v27 = vadd.f32 %v2769_v26, %v2767_v9 }
 0x3be   : > { %v2775_v6 = vpop.eup %1822 }
 0x3bf   : > { %v2779_v15 = vpop.eup %1824  ;;  %v1248_v19 = vadd.f32 %v2775_v6, %v2771_v3 }
 0x3c0   : > { %v2781_v12 = vpop.eup %1826  ;;  %1225 = vadd.xlane.f32.xlu1 %v1224_v11  ;;  %1228 = vadd.xlane.f32.xlu0 %v1227_v27 }
 0x3c1   : > { %v1251_v7 = vadd.f32 %v2781_v12, %v2779_v15  ;;  %v2785_v30 = vpop.eup %1828 }
 0x3c2   : > { %v2789_v10 = vpop.eup %1830 }
 0x3c3   : > { %v2791_v33 = vpop.eup %1832  ;;  %v1230_v16 = vadd.f32 %v2789_v10, %v2785_v30 }
 0x3c4   : > { %1249 = vadd.xlane.f32.xlu1 %v1248_v19  ;;  %1252 = vadd.xlane.f32.xlu0 %v1251_v7  ;;  %v2795_v17 = vpop.eup %1834 }
 0x3c5   : > { %v1254_v39 = vadd.f32 %v2795_v17, %v2791_v33 }
 0x3c8   : > { %1231 = vadd.xlane.f32.xlu1 %v1230_v16 }
 0x3cc   : > { %1255 = vadd.xlane.f32.xlu1 %v1254_v39 }
 0x433   : > { %v1211_v42 = vpop.xlane.xlu0 %1210 }
 0x434   : > { %1836 = vrcp.f32 %v1211_v42 }
 0x439   : > { %v1235_v18 = vpop.xlane.xlu0 %1234 }
 0x43a   : > { %1838 = vrcp.f32 %v1235_v18 }
 0x43d   : > { %v1214_v20 = vpop.xlane.xlu1 %1213  ;;  %v1217_v25 = vpop.xlane.xlu0 %1216 }
 0x43e   : > { %v1837_v35 = vpop.eup %1836  ;;  %1840 = vrcp.f32 %v1214_v20 }
 0x43f   : > { %v1273_v21 = vmul.f32 %v1837_v35, %v1211_v42  ;;  %1842 = vrcp.f32 %v1217_v25 }
 0x441   : > { %v1289_v32 = vsub.f32 2.0, %v1273_v21  ;;  %v1238_v24 = vpop.xlane.xlu1 %1237  ;;  %v1241_v28 = vpop.xlane.xlu0 %1240 }
 0x442   : > { %1844 = vrcp.f32 %v1238_v24 }
 0x443   : > { %v1305_v49 = vmul.f32 %v1837_v35, %v1289_v32  ;;  %1846 = vrcp.f32 %v1241_v28 }
 0x444   : > { %v1839_v43 = vpop.eup %1838 }
 0x445   : > { %v1321_v44 = vmul.f32 %v2685_v31, %v1305_v49  ;;  %v1322_v29 = vmul.f32 %v2687_v38, %v1305_v49  ;;  %v1281_v40 = vmul.f32 %v1839_v43, %v1235_v18  ;;  %v1220_v41 = vpop.xlane.xlu1 %1219  ;;  %v1223_v46 = vpop.xlane.xlu0 %1222 }
 0x446   : > { %1848 = vrcp.f32 %v1220_v41 }
 0x447   : > { %1353 = vst [vmem:[%s2092_s26] sm:$0xff] %v1321_v44  ;;  %1354 = vst [vmem:[%s2092_s26 + $0x8] sm:$0xff] %v1322_v29  ;;  %v1297_v47 = vsub.f32 2.0, %v1281_v40  ;;  %1850 = vrcp.f32 %v1223_v46 }
 0x448   : > { %v1841_v50 = vpop.eup %1840 }
 0x449   : > { %v1843_v63 = vpop.eup %1842  ;;  %v1313_v51 = vmul.f32 %v1839_v43, %v1297_v47  ;;  %v1274_v54 = vmul.f32 %v1841_v50, %v1214_v20  ;;  %v1244_v48 = vpop.xlane.xlu1 %1243 }
 0x44a   : > { %v1247_v61 = vpop.xlane.xlu0 %1246  ;;  %v1275_v0 = vmul.f32 %v1843_v63, %v1217_v25  ;;  %1852 = vrcp.f32 %v1244_v48 }
 0x44b   : > { %v1337_v31 = vmul.f32 %v2699_v62, %v1313_v51  ;;  %v1338_v38 = vmul.f32 %v2703_v2, %v1313_v51  ;;  %v1290_v55 = vsub.f32 2.0, %v1274_v54  ;;  %1854 = vrcp.f32 %v1247_v61 }
 0x44c   : > { %v1845_v5 = vpop.eup %1844  ;;  %v1291_v27 = vsub.f32 2.0, %v1275_v0 }
 0x44d   : > { %v1847_v11 = vpop.eup %1846  ;;  %1369 = vst [vmem:[%s2092_s26 + $0x80] sm:$0xff] %v1337_v31  ;;  %1370 = vst [vmem:[%s2092_s26 + $0x88] sm:$0xff] %v1338_v38  ;;  %v1306_v7 = vmul.f32 %v1841_v50, %v1290_v55  ;;  %v1282_v19 = vmul.f32 %v1845_v5, %v1238_v24  ;;  %v1226_v16 = vpop.xlane.xlu1 %1225 }
 0x44e   : > { %v1229_v39 = vpop.xlane.xlu0 %1228  ;;  %v1307_v42 = vmul.f32 %v1843_v63, %v1291_v27  ;;  %v1283_v18 = vmul.f32 %v1847_v11, %v1241_v28  ;;  %1856 = vrcp.f32 %v1226_v16 }
 0x44f   : > { %v1323_v62 = vmul.f32 %v2713_v13, %v1306_v7  ;;  %v1324_v2 = vmul.f32 %v2717_v14, %v1306_v7  ;;  %v1298_v20 = vsub.f32 2.0, %v1282_v19  ;;  %1858 = vrcp.f32 %v1229_v39 }
 0x450   : > { %v1849_v25 = vpop.eup %1848  ;;  %v1325_v35 = vmul.f32 %v2707_v4, %v1307_v42  ;;  %v1326_v21 = vmul.f32 %v2709_v8, %v1307_v42  ;;  %v1299_v32 = vsub.f32 2.0, %v1283_v18 }
 0x451   : > { %v1851_v24 = vpop.eup %1850  ;;  %1355 = vst [vmem:[%s2092_s26 + $0x10] sm:$0xff] %v1323_v62  ;;  %1356 = vst [vmem:[%s2092_s26 + $0x18] sm:$0xff] %v1324_v2  ;;  %v1314_v49 = vmul.f32 %v1845_v5, %v1298_v20  ;;  %v1276_v28 = vmul.f32 %v1849_v25, %v1220_v41  ;;  %v1250_v43 = vpop.xlane.xlu1 %1249 }
 0x452   : > { %v1253_v44 = vpop.xlane.xlu0 %1252  ;;  %1357 = vst [vmem:[%s2092_s26 + $0x20] sm:$0xff] %v1325_v35  ;;  %1358 = vst [vmem:[%s2092_s26 + $0x28] sm:$0xff] %v1326_v21  ;;  %v1315_v13 = vmul.f32 %v1847_v11, %v1299_v32  ;;  %v1277_v14 = vmul.f32 %v1851_v24, %v1223_v46  ;;  %1860 = vrcp.f32 %v1250_v43 }
 0x453   : > { %v1339_v4 = vmul.f32 %v2695_v56, %v1314_v49  ;;  %v1340_v8 = vmul.f32 %v2697_v60, %v1314_v49  ;;  %v1292_v29 = vsub.f32 2.0, %v1276_v28  ;;  %1862 = vrcp.f32 %v1253_v44 }
 0x454   : > { %v1853_v40 = vpop.eup %1852  ;;  %v1341_v41 = vmul.f32 %v2727_v22, %v1315_v13  ;;  %v1342_v47 = vmul.f32 %v2730_v23, %v1315_v13  ;;  %v1293_v50 = vsub.f32 2.0, %v1277_v14 }
 0x455   : > { %v1855_v63 = vpop.eup %1854  ;;  %1371 = vst [vmem:[%s2092_s26 + $0x90] sm:$0xff] %v1339_v4  ;;  %1372 = vst [vmem:[%s2092_s26 + $0x98] sm:$0xff] %v1340_v8  ;;  %v1308_v51 = vmul.f32 %v1849_v25, %v1292_v29  ;;  %v1284_v46 = vmul.f32 %v1853_v40, %v1244_v48  ;;  %v1232_v54 = vpop.xlane.xlu1 %1231 }
 0x456   : > { %1373 = vst [vmem:[%s2092_s26 + $0xa0] sm:$0xff] %v1341_v41  ;;  %1374 = vst [vmem:[%s2092_s26 + $0xa8] sm:$0xff] %v1342_v47  ;;  %v1309_v56 = vmul.f32 %v1851_v24, %v1293_v50  ;;  %v1285_v60 = vmul.f32 %v1855_v63, %v1247_v61  ;;  %1864 = vrcp.f32 %v1232_v54 }
 0x457   : > { %v1327_v22 = vmul.f32 %v2723_v34, %v1308_v51  ;;  %v1328_v23 = vmul.f32 %v2734_v53, %v1308_v51  ;;  %v1300_v0 = vsub.f32 2.0, %v1284_v46 }
 0x458   : > { %v1857_v31 = vpop.eup %1856  ;;  %v1329_v38 = vmul.f32 %v2743_v45, %v1309_v56  ;;  %v1330_v55 = vmul.f32 %v2745_v36, %v1309_v56  ;;  %v1301_v48 = vsub.f32 2.0, %v1285_v60 }
 0x459   : > { %v1859_v5 = vpop.eup %1858  ;;  %1359 = vst [vmem:[%s2092_s26 + $0x30] sm:$0xff] %v1327_v22  ;;  %1360 = vst [vmem:[%s2092_s26 + $0x38] sm:$0xff] %v1328_v23  ;;  %v1316_v27 = vmul.f32 %v1853_v40, %v1300_v0  ;;  %v1278_v11 = vmul.f32 %v1857_v31, %v1226_v16  ;;  %v1256_v61 = vpop.xlane.xlu1 %1255 }
 0x45a   : > { %1361 = vst [vmem:[%s2092_s26 + $0x40] sm:$0xff] %v1329_v38  ;;  %1362 = vst [vmem:[%s2092_s26 + $0x48] sm:$0xff] %v1330_v55  ;;  %v1317_v34 = vmul.f32 %v1855_v63, %v1301_v48  ;;  %v1279_v53 = vmul.f32 %v1859_v5, %v1229_v39  ;;  %1866 = vrcp.f32 %v1256_v61 }
 0x45b   : > { %v1343_v45 = vmul.f32 %v2737_v37, %v1316_v27  ;;  %v1344_v36 = vmul.f32 %v2748_v59, %v1316_v27  ;;  %v1294_v7 = vsub.f32 2.0, %v1278_v11 }
 0x45c   : > { %v1861_v19 = vpop.eup %1860  ;;  %v1345_v42 = vmul.f32 %v2755_v57, %v1317_v34  ;;  %v1346_v18 = vmul.f32 %v2757_v58, %v1317_v34  ;;  %v1295_v16 = vsub.f32 2.0, %v1279_v53 }
 0x45d   : > { %v1863_v62 = vpop.eup %1862  ;;  %1375 = vst [vmem:[%s2092_s26 + $0xb0] sm:$0xff] %v1343_v45  ;;  %1376 = vst [vmem:[%s2092_s26 + $0xb8] sm:$0xff] %v1344_v36  ;;  %v1310_v2 = vmul.f32 %v1857_v31, %v1294_v7  ;;  %v1286_v20 = vmul.f32 %v1861_v19, %v1250_v43 }
 0x45e   : > { %1377 = vst [vmem:[%s2092_s26 + $0xc0] sm:$0xff] %v1345_v42  ;;  %1378 = vst [vmem:[%s2092_s26 + $0xc8] sm:$0xff] %v1346_v18  ;;  %v1311_v37 = vmul.f32 %v1859_v5, %v1295_v16  ;;  %v1287_v59 = vmul.f32 %v1863_v62, %v1253_v44 }
 0x45f   : > { %v1331_v57 = vmul.f32 %v2759_v52, %v1310_v2  ;;  %v1332_v58 = vmul.f32 %v2763_v1, %v1310_v2  ;;  %v1302_v39 = vsub.f32 2.0, %v1286_v20 }
 0x460   : > { %v1865_v25 = vpop.eup %1864  ;;  %v1333_v35 = vmul.f32 %v2767_v9, %v1311_v37  ;;  %v1334_v21 = vmul.f32 %v2769_v26, %v1311_v37  ;;  %v1303_v32 = vsub.f32 2.0, %v1287_v59 }
 0x461   : > { %1363 = vst [vmem:[%s2092_s26 + $0x50] sm:$0xff] %v1331_v57  ;;  %1364 = vst [vmem:[%s2092_s26 + $0x58] sm:$0xff] %v1332_v58  ;;  %v1318_v24 = vmul.f32 %v1861_v19, %v1302_v39  ;;  %v1280_v49 = vmul.f32 %v1865_v25, %v1232_v54 }
 0x462   : > { %1365 = vst [vmem:[%s2092_s26 + $0x60] sm:$0xff] %v1333_v35  ;;  %1366 = vst [vmem:[%s2092_s26 + $0x68] sm:$0xff] %v1334_v21  ;;  %v1319_v52 = vmul.f32 %v1863_v62, %v1303_v32 }
 0x463   : > { %v1347_v1 = vmul.f32 %v2771_v3, %v1318_v24  ;;  %v1348_v9 = vmul.f32 %v2775_v6, %v1318_v24  ;;  %v1296_v26 = vsub.f32 2.0, %v1280_v49 }
 0x464   : > { %v1867_v28 = vpop.eup %1866  ;;  %v1349_v43 = vmul.f32 %v2779_v15, %v1319_v52  ;;  %v1350_v44 = vmul.f32 %v2781_v12, %v1319_v52 }
 0x465   : > { %1379 = vst [vmem:[%s2092_s26 + $0xd0] sm:$0xff] %v1347_v1  ;;  %1380 = vst [vmem:[%s2092_s26 + $0xd8] sm:$0xff] %v1348_v9  ;;  %v1312_v13 = vmul.f32 %v1865_v25, %v1296_v26  ;;  %v1288_v14 = vmul.f32 %v1867_v28, %v1256_v61 }
 0x466   : > { %1381 = vst [vmem:[%s2092_s26 + $0xe0] sm:$0xff] %v1349_v43  ;;  %1382 = vst [vmem:[%s2092_s26 + $0xe8] sm:$0xff] %v1350_v44 }
 0x467   : > { %v1335_v3 = vmul.f32 %v2785_v30, %v1312_v13  ;;  %v1336_v6 = vmul.f32 %v2789_v10, %v1312_v13  ;;  %v1304_v4 = vsub.f32 2.0, %v1288_v14 }
 0x469   : > { %1367 = vst [vmem:[%s2092_s26 + $0x70] sm:$0xff] %v1335_v3  ;;  %1368 = vst [vmem:[%s2092_s26 + $0x78] sm:$0xff] %v1336_v6  ;;  %v1320_v15 = vmul.f32 %v1867_v28, %v1304_v4 }
 0x46b   : > { %v1351_v12 = vmul.f32 %v2791_v33, %v1320_v15  ;;  %v1352_v30 = vmul.f32 %v2795_v17, %v1320_v15 }
 0x46d   : > { %1383 = vst [vmem:[%s2092_s26 + $0xf0] sm:$0xff] %v1351_v12  ;;  %1384 = vst [vmem:[%s2092_s26 + $0xf8] sm:$0xff] %v1352_v30 }
 0x46e   : > { %1881 = shalt.err (!%p1878_p9)
}
 0x46f   : > { %s1882_s26 = scalar_lea.hbm %s2865_s13, 4096  ;;  %s1886_s7 = scalar_lea.hbm %s2933_s6, 16384 }
 0x470   : > { %p1883_p10 = scmp.ne.s32.totalorder %s2865_s13, %s1882_s26  ;;  %p1887_p13 = scmp.lt.u32.totalorder %s2865_s13, %s2933_s6 }
 0x471   : > { %p1888_p0 = scmp.lt.u32.totalorder %s1886_s7, %s1882_s26  ;;  %p1890_p2 = scmp.lt.u32.totalorder %s1882_s26, %s2865_s13 }
 0x472   : > { %p1884_p11 = pnand %p1883_p10, %p2056_p3 }
 0x473   : > { %p1889_p1 = por %p1888_p0, %p1887_p13 }
 0x474   : > { %p1885_p12 = pneg %p1884_p11 }
 0x475   : > { %p1891_p4 = por %p1890_p2, %p1889_p1 }
 0x477   : > { %p1892_p5 = pnand %p1891_p4, %p1885_p12 }
 0x479   : > { %1895 = shalt.err (!%p1892_p5)
}
 0x47a   : > { %s1968_s24 = smov 256   ;;  %s1969_s25 = smov 16  }
 0x47b   : > { %1696 = dma.vmem_to_hbm [thread:$0]  (%p2056_p3), %s2867_s18, 4096, %s2865_s13, %s2875_s16, %s1968_s24, %s1968_s24, %s1969_s25  }
 0x47c PF: > { %p1702_p6 = scmp.ge.s32.totalorder %s1962_s28, 2  ;;  %s1417_s30 = sand.u32 1, %s1934_s21  }
 0x47d   : > { %s1418_s9 = scalar_lea.sflag [#allocation5], %s1417_s30 }
 0x47e   : > { %p1699_p7 = pnand %p1702_p6, %p2065_p8 }
 0x480   : > { %1929 = dma.done.wait (!%p1699_p7), %s1418_s9, 4096  }
 0x481   : > { %1931 = vsyncadd (!%p1699_p7), %s1418_s9, 4294963200  ;;  %s19_s28 = sadd.s32 1, %s1962_s28   ;;  %s2947_s15 = sld [smem:[#allocation11_spill]] }
 0x482   : > { %p16_p9 = scmp.ge.s32.totalorder %s19_s28, 6   ;;  %s2948_s24 = sld [smem:[#allocation7_spill]] }
 0x483   : > { %s2949_s25 = sld [smem:[#allocation8_spill]]  ;;  %s2950_s26 = sld [smem:[#allocation9_spill]] }
 0x484   : > { %s2951_s27 = sld [smem:[#allocation10_spill]]  ;;  %s2952_s21 = smov %s1938_s22 }
 0x485   : > { %s2953_s22 = smov %s1942_s23  ;;  %18 = sbr.rel (!%p16_p9) target bundleno = 5 (0x5), region = 86 }
 0x487   : > { %s2954_s23 = smov %s2947_s15 }
 0x48c   :  { %1423 = vsyncpa [#allocation5], 1 }
 0x48d   :  { %1425 = vsyncpa [#allocation5 + $0x1], 1 }

</bundles_post_ra>
